<compile_context>
chip_gen: v7x
topology: tpu7x:2x2x1
jax: 0.10.0
libtpu: 0.0.40
codegen_flags: <defaults>
</compile_context>

<pallas_src>
import math

import jax
import jax.numpy as jnp
from jax.experimental import pallas as pl
from jax.experimental.pallas import tpu as pltpu


_SMEM_SPEC = pl.BlockSpec(memory_space=pltpu.MemorySpace.SMEM)


def _full_spec(shape):
    # whole-array block for the tiny dense layer (grid = ())
    return pl.BlockSpec(shape, lambda: (0,) * len(shape))


def _pick_batch_block(n):
    """Images per grid step: amortize the ~0.35us fixed step cost, but keep >= 2
    grid steps whenever possible so both v7x TensorCores get work."""
    if n < 4:
        return 1
    for b in (8, 4, 2):
        if n % b == 0 and n // b >= 2:
            return b
    return 1


def _shift_flat(x, off):
    """result[:, p] = x[:, p + off].  The wrapped tail is never read by valid conv
    outputs (max needed index is exactly the last flat-padded element)."""
    if off == 0:
        return x
    return jnp.concatenate([x[:, off:], x[:, :off]], axis=1)


def _make_stage_kernel(b_blk, cin, cout, h, w, kh, kw, ph, pw, dh, dw):
    """Fused BN-apply(prev) -> pad -> conv(+bias, MXU) -> maxpool -> relu -> stats."""
    padh, padw = kh // 2, kw // 2
    hp, wp = h + 2 * padh, w + 2 * padw
    lp = hp * wp
    ho = (h - (dh * (ph - 1) + 1)) // ph + 1
    wo = (w - (dw * (pw - 1) + 1)) // pw + 1
    K = kh * kw * cin

    def kernel(x_ref, scale_ref, shift_ref, w_ref, b_ref, y_ref, stats_ref):
        wmat = w_ref[...]                      # (cout, K) VMEM value, reused per image
        bias = b_ref[...]                      # (cout, 1)
        rows = []
        ssum = jnp.zeros((cout,), jnp.float32)
        ssq = jnp.zeros((cout,), jnp.float32)

        for b in range(b_blk):                 # images of this block (unrolled)
            # -- previous-stage BatchNorm: folded per-channel scale/shift (SMEM)
            xi = x_ref[b]                                              # (cin, h*w)
            parts = [xi[ci:ci + 1] * scale_ref[ci] + shift_ref[ci] for ci in range(cin)]
            xs = parts[0] if cin == 1 else jnp.concatenate(parts, axis=0)
            xs = xs.reshape(cin, h, w)

            # -- zero 'same' padding built as a value (no scratch memset)
            if padw > 0:
                zw = jnp.zeros((cin, h, padw), jnp.float32)
                xs = jnp.concatenate([zw, xs, zw], axis=2)
            if padh > 0:
                zh = jnp.zeros((cin, padh, wp), jnp.float32)
                xs = jnp.concatenate([zh, xs, zh], axis=1)
            xpf = xs.reshape(cin, lp)          # flat padded image, lane-dense

            # -- im2col: every conv tap is a lane shift of the flat padded image.
            #    Row order is tap-major / channel-minor, matching the wrapper's
            #    W.transpose(0, 2, 3, 1).reshape(cout, kh*kw*cin).
            pieces = []
            for di in range(kh):
                for dj in range(kw):
                    pieces.append(_shift_flat(xpf, di * wp + dj))
            patches = jnp.concatenate(pieces, axis=0)                  # (K, lp)

            # -- conv (+bias) as ONE MXU matmul over the whole padded plane; the
            #    valid output lives at flat index r*wp + c, so the crop is [:h, :w].
            acc = jnp.dot(wmat, patches, preferred_element_type=jnp.float32) + bias
            conv = acc.reshape(cout, hp, wp)[:, :h, :w]                # (cout, h, w)

            # -- maxpool: dilation-aware window max via shifted slices ...
            wc = w - (pw - 1) * dw
            hc = h - (ph - 1) * dh
            cw = conv[:, :, :wc]
            for j in range(1, pw):
                cw = jnp.maximum(cw, conv[:, :, j * dw:j * dw + wc])
            rw = cw[:, :hc, :]
            for i in range(1, ph):
                rw = jnp.maximum(rw, cw[:, i * dh:i * dh + hc, :])
            # ... then anchor subsample (stride == pool size) via pad->reshape->[0]
            if pw > 1:
                padc = wo * pw - wc
                if padc > 0:
                    rw = jnp.concatenate(
                        [rw, jnp.zeros((cout, hc, padc), jnp.float32)], axis=2)
                rw = rw.reshape(cout, hc, wo, pw)[:, :, :, 0]
            else:
                rw = rw[:, :, :wo]
            if ph > 1:
                padr = ho * ph - hc
                if padr > 0:
                    rw = jnp.concatenate(
                        [rw, jnp.zeros((cout, padr, wo), jnp.float32)], axis=1)
                rw = rw.reshape(cout, ho, ph, wo)[:, :, 0, :]
            else:
                rw = rw[:, :ho, :]

            pooled = jnp.maximum(rw, 0.0)                              # relu (as torch)
            pr = pooled.reshape(cout, ho * wo)

            # -- fused BatchNorm statistics of THIS stage's output (no 2nd HBM pass)
            ssum = ssum + jnp.sum(pr, axis=1)
            ssq = ssq + jnp.sum(pr * pr, axis=1)
            rows.append(pr.reshape(1, cout, ho * wo))

        # one lane-dense store of the whole pooled block
        y_ref[...] = rows[0] if b_blk == 1 else jnp.concatenate(rows, axis=0)
        stats_ref[...] = jnp.concatenate(
            [ssum.reshape(1, 1, cout), ssq.reshape(1, 1, cout)], axis=1)

    return kernel, (ho, wo)


def _stage_forward(x, scale, shift, wmat, bias, cin, cout, h, w, kh, kw, pool, dil,
                   b_blk):
    """One fused stage over the whole batch.  x: (N, Cin, H*W) f32 pre-BN activations."""
    n = x.shape[0]
    assert n % b_blk == 0
    ph, pw = pool
    dh, dw = dil
    kernel, (ho, wo) = _make_stage_kernel(b_blk, cin, cout, h, w, kh, kw, ph, pw, dh, dw)
    nb = n // b_blk
    K = kh * kw * cin
    y, stats = pl.pallas_call(
        kernel,
        out_shape=(jax.ShapeDtypeStruct((n, cout, ho * wo), jnp.float32),
                   jax.ShapeDtypeStruct((nb, 2, cout), jnp.float32)),
        grid=(nb,),
        in_specs=[
            pl.BlockSpec((b_blk, cin, h * w), lambda i: (i, 0, 0)),
            _SMEM_SPEC,                                   # scale (cin,)  folded prev BN
            _SMEM_SPEC,                                   # shift (cin,)
            pl.BlockSpec((cout, K), lambda i: (0, 0)),    # conv weights (VMEM, MXU lhs)
            pl.BlockSpec((cout, 1), lambda i: (0, 0)),    # conv bias
        ],
        out_specs=(pl.BlockSpec((b_blk, cout, ho * wo), lambda i: (i, 0, 0)),
                   pl.BlockSpec((1, 2, cout), lambda i: (i, 0, 0))),
        compiler_params=pltpu.CompilerParams(
            dimension_semantics=("parallel",),            # image blocks are independent
            vmem_limit_bytes=32 * 1024 * 1024),
    )(x, scale, shift, wmat, bias)
    return y, stats, ho, wo


def _dense_sigmoid_kernel(x_ref, w_ref, b_ref, boost_ref, o_ref):
    """dense5 + sigmoid(boost * y): stable sigmoid, EUP approximate reciprocal."""
    z = jnp.dot(x_ref[...], w_ref[...], preferred_element_type=jnp.float32) + b_ref[...]
    z = boost_ref[0] * z
    e = jnp.exp(-jnp.abs(z))                    # no overflow for any z
    p = pl.reciprocal(1.0 + e, approx=True)
    o_ref[...] = jnp.where(z >= 0, p, 1.0 - p)


class PatternLearnerPallas:
    def __init__(self, input_shape, output_shape, conv_size=(3, 3), nbr_channels=2,
                 maxpool_size=(2, 1), maxpool_lastsize=(2, 2), maxpool_dilatation=(1, 1),
                 key=jax.random.PRNGKey(0)):
        self.input_shape = input_shape          # (C, H, W), C must be 1 (conv1 in=1)
        self.output_shape = output_shape
        self.kh, self.kw = conv_size
        assert self.kh % 2 == 1 and self.kw % 2 == 1, "'same' padding needs odd conv_size"
        nc = nbr_channels
        self.pools = [maxpool_size, maxpool_size, maxpool_size, maxpool_lastsize]
        self.dils = [(1, 1), (1, 1), (1, 1), maxpool_dilatation]
        self.chans = [1, nc, 2 * nc, 4 * nc, 8 * nc]

        # static shape bookkeeping (equivalent of _get_features_size)
        h, w = input_shape[1], input_shape[2]
        for (ph, pw), (dh, dw) in zip(self.pools, self.dils):
            h = (h - (dh * (ph - 1) + 1)) // ph + 1
            w = (w - (dw * (pw - 1) + 1)) // pw + 1
        assert h > 0 and w > 0, "input too small for this pooling configuration"
        self._features_in = self.chans[-1] * h * w
        self.out_features = math.prod(output_shape)

        # deterministic synthetic parameters
        keys = jax.random.split(key, 10)
        self.wmat, self.bias2d, self.bn_g, self.bn_b = [], [], [], []
        for i in range(4):
            cin, cout = self.chans[i], self.chans[i + 1]
            cw = 0.1 * jax.random.normal(keys[i], (cout, cin, self.kh, self.kw),
                                         dtype=jnp.float32)
            cb = 0.05 * jax.random.normal(keys[4 + i], (cout,), dtype=jnp.float32)
            # tap-major / channel-minor layout matching the kernel's patch rows
            self.wmat.append(cw.transpose(0, 2, 3, 1).reshape(cout, self.kh * self.kw * cin))
            self.bias2d.append(cb.reshape(cout, 1))
            self.bn_g.append(jnp.ones((cout,), jnp.float32))   # BN affine defaults
            self.bn_b.append(jnp.zeros((cout,), jnp.float32))
        self.wd = 0.05 * jax.random.normal(
            keys[8], (self._features_in, self.out_features), dtype=jnp.float32)
        self.bd = 0.05 * jax.random.normal(keys[9], (1, self.out_features), dtype=jnp.float32)
        self.boost = jnp.ones((1,), jnp.float32)   # torch.empty is uninitialized -> 1.0

    def forward(self, x_nchw):
        x = x_nchw.astype(jnp.float32)             # NCHW like torch
        n = x.shape[0]
        b_blk = _pick_batch_block(n)
        h, w = self.input_shape[1], self.input_shape[2]
        act = x.reshape(n, 1, h * w)               # lane-dense (N, C, H*W) activations
        scale = jnp.ones((1,), jnp.float32)        # identity "previous BN" for stage 1
        shift = jnp.zeros((1,), jnp.float32)

        for i in range(4):
            cin, cout = self.chans[i], self.chans[i + 1]
            act, stats, ho, wo = _stage_forward(
                act, scale, shift, self.wmat[i], self.bias2d[i],
                cin, cout, h, w, self.kh, self.kw, self.pools[i], self.dils[i], b_blk)
            # full-batch training-mode BN statistics from the fused (sum, sumsq) output
            tot = jnp.sum(stats, axis=0)           # (2, cout)
            count = float(n * ho * wo)
            mean = tot[0] / count
            var = jnp.maximum(tot[1] / count - mean * mean, 0.0)   # biased, like torch BN
            scale = self.bn_g[i] * jax.lax.rsqrt(var + 1e-5)
            shift = self.bn_b[i] - mean * scale
            h, w = ho, wo

        # fold the last BatchNorm into the dense layer; features flattened C-major,
        # exactly like torch's output.view(-1, C*H*W)
        s_feat = jnp.repeat(scale, h * w)
        t_feat = jnp.repeat(shift, h * w)
        wd_eff = self.wd * s_feat[:, None]
        bd_eff = self.bd + (t_feat @ self.wd)[None, :]
        feat = act.reshape(n, self._features_in)

        out = pl.pallas_call(
            _dense_sigmoid_kernel,
            out_shape=jax.ShapeDtypeStruct((n, self.out_features), jnp.float32),
            in_specs=[_full_spec(feat.shape), _full_spec(wd_eff.shape),
                      _full_spec(bd_eff.shape), _SMEM_SPEC],
            out_specs=_full_spec((n, self.out_features)),
            compiler_params=pltpu.CompilerParams(vmem_limit_bytes=32 * 1024 * 1024),
        )(feat, wd_eff, bd_eff, self.boost)
        return out.reshape(n, *self.output_shape)


if __name__ == "__main__":
    key = jax.random.PRNGKey(0)
    k_x, k_p = jax.random.split(key)

    input_shape = (1, 32, 16)       # (C, H, W)
    output_shape = (1, 4, 4)
    batch = 2

    model = PatternLearnerPallas(input_shape, output_shape, key=k_p)
    x = jax.random.normal(k_x, (batch, *input_shape), dtype=jnp.float32)   # NCHW

    y = model.forward(x)
    y = jax.block_until_ready(y)
    assert y.shape == (batch, *output_shape)
    assert bool(jnp.all(jnp.isfinite(y)))
    assert bool(jnp.all((y >= 0.0) & (y <= 1.0)))   # sigmoid range
    print("KERNEL_OK")
</pallas_src>

<mosaic_0001>
module attributes {stable_mosaic.version = 11 : i64} {
  func.func @kernel(%arg0: i32, %arg1: memref<1x1x512xf32, #tpu.memory_space<vmem>>, %arg2: memref<1xf32, #tpu.memory_space<smem>>, %arg3: memref<1xf32, #tpu.memory_space<smem>>, %arg4: memref<2x9xf32, #tpu.memory_space<vmem>>, %arg5: memref<2x1xf32, #tpu.memory_space<vmem>>, %arg6: memref<1x2x256xf32, #tpu.memory_space<vmem>>, %arg7: memref<1x2x2xf32, #tpu.memory_space<vmem>>) attributes {dimension_semantics = [#tpu.dimension_semantics<parallel>], iteration_bounds = array<i64: 2>, scalar_prefetch = 0 : i64, scratch_operands = 0 : i64, tpu.core_type = #tpu.core_type<tc>, window_params = [{transform_indices = @transform_0, window_bounds = array<i64: 1, 1, 512>}, {transform_indices = @transform_1, window_bounds = array<i64: 1>}, {transform_indices = @transform_2, window_bounds = array<i64: 1>}, {pipeline_mode = #tpu.pipeline_mode<synchronous>, transform_indices = @transform_3, window_bounds = array<i64: 2, 9>}, {pipeline_mode = #tpu.pipeline_mode<synchronous>, transform_indices = @transform_4, window_bounds = array<i64: 2, 1>}, {transform_indices = @transform_5, window_bounds = array<i64: 1, 2, 256>}, {transform_indices = @transform_6, window_bounds = array<i64: 1, 2, 2>}]} {
    %c0 = arith.constant 0 : index
    %c0_0 = arith.constant 0 : index
    %0 = vector.load %arg4[%c0, %c0_0] : memref<2x9xf32, #tpu.memory_space<vmem>>, vector<2x9xf32>
    %c0_1 = arith.constant 0 : index
    %c0_2 = arith.constant 0 : index
    %1 = vector.load %arg5[%c0_1, %c0_2] : memref<2x1xf32, #tpu.memory_space<vmem>>, vector<2x1xf32>
    %cst = arith.constant 0.000000e+00 : f32
    %2 = vector.broadcast %cst : f32 to vector<2xf32>
    %cst_3 = arith.constant 0.000000e+00 : f32
    %3 = vector.broadcast %cst_3 : f32 to vector<2xf32>
    %c0_4 = arith.constant 0 : index
    %c0_5 = arith.constant 0 : index
    %c0_6 = arith.constant 0 : index
    %4 = vector.load %arg1[%c0_4, %c0_5, %c0_6] : memref<1x1x512xf32, #tpu.memory_space<vmem>>, vector<1x1x512xf32>
    %5 = vector.shape_cast %4 : vector<1x1x512xf32> to vector<1x512xf32>
    %c0_7 = arith.constant 0 : index
    %6 = memref.load %arg2[%c0_7] : memref<1xf32, #tpu.memory_space<smem>>
    %7 = vector.broadcast %6 : f32 to vector<1x512xf32>
    %8 = arith.mulf %5, %7 : vector<1x512xf32>
    %c0_8 = arith.constant 0 : index
    %9 = memref.load %arg3[%c0_8] : memref<1xf32, #tpu.memory_space<smem>>
    %10 = vector.broadcast %9 : f32 to vector<1x512xf32>
    %11 = arith.addf %8, %10 : vector<1x512xf32>
    %12 = vector.shape_cast %11 : vector<1x512xf32> to vector<1x32x16xf32>
    %cst_9 = arith.constant 0.000000e+00 : f32
    %13 = vector.broadcast %cst_9 : f32 to vector<1x32x1xf32>
    %14 = tpu.concatenate %13, %12, %13 in 2 : vector<1x32x1xf32>, vector<1x32x16xf32>, vector<1x32x1xf32> -> vector<1x32x18xf32>
    %cst_10 = arith.constant 0.000000e+00 : f32
    %15 = vector.broadcast %cst_10 : f32 to vector<1x1x18xf32>
    %16 = tpu.concatenate %15, %14, %15 in 1 : vector<1x1x18xf32>, vector<1x32x18xf32>, vector<1x1x18xf32> -> vector<1x34x18xf32>
    %17 = vector.shape_cast %16 : vector<1x34x18xf32> to vector<1x612xf32>
    %18 = vector.extract_strided_slice %17 {offsets = [0, 1], sizes = [1, 611], strides = [1, 1]} : vector<1x612xf32> to vector<1x611xf32>
    %19 = vector.extract_strided_slice %17 {offsets = [0, 0], sizes = [1, 1], strides = [1, 1]} : vector<1x612xf32> to vector<1x1xf32>
    %20 = tpu.concatenate %18, %19 in 1 : vector<1x611xf32>, vector<1x1xf32> -> vector<1x612xf32>
    %21 = vector.extract_strided_slice %17 {offsets = [0, 2], sizes = [1, 610], strides = [1, 1]} : vector<1x612xf32> to vector<1x610xf32>
    %22 = vector.extract_strided_slice %17 {offsets = [0, 0], sizes = [1, 2], strides = [1, 1]} : vector<1x612xf32> to vector<1x2xf32>
    %23 = tpu.concatenate %21, %22 in 1 : vector<1x610xf32>, vector<1x2xf32> -> vector<1x612xf32>
    %24 = vector.extract_strided_slice %17 {offsets = [0, 18], sizes = [1, 594], strides = [1, 1]} : vector<1x612xf32> to vector<1x594xf32>
    %25 = vector.extract_strided_slice %17 {offsets = [0, 0], sizes = [1, 18], strides = [1, 1]} : vector<1x612xf32> to vector<1x18xf32>
    %26 = tpu.concatenate %24, %25 in 1 : vector<1x594xf32>, vector<1x18xf32> -> vector<1x612xf32>
    %27 = vector.extract_strided_slice %17 {offsets = [0, 19], sizes = [1, 593], strides = [1, 1]} : vector<1x612xf32> to vector<1x593xf32>
    %28 = vector.extract_strided_slice %17 {offsets = [0, 0], sizes = [1, 19], strides = [1, 1]} : vector<1x612xf32> to vector<1x19xf32>
    %29 = tpu.concatenate %27, %28 in 1 : vector<1x593xf32>, vector<1x19xf32> -> vector<1x612xf32>
    %30 = vector.extract_strided_slice %17 {offsets = [0, 20], sizes = [1, 592], strides = [1, 1]} : vector<1x612xf32> to vector<1x592xf32>
    %31 = vector.extract_strided_slice %17 {offsets = [0, 0], sizes = [1, 20], strides = [1, 1]} : vector<1x612xf32> to vector<1x20xf32>
    %32 = tpu.concatenate %30, %31 in 1 : vector<1x592xf32>, vector<1x20xf32> -> vector<1x612xf32>
    %33 = vector.extract_strided_slice %17 {offsets = [0, 36], sizes = [1, 576], strides = [1, 1]} : vector<1x612xf32> to vector<1x576xf32>
    %34 = vector.extract_strided_slice %17 {offsets = [0, 0], sizes = [1, 36], strides = [1, 1]} : vector<1x612xf32> to vector<1x36xf32>
    %35 = tpu.concatenate %33, %34 in 1 : vector<1x576xf32>, vector<1x36xf32> -> vector<1x612xf32>
    %36 = vector.extract_strided_slice %17 {offsets = [0, 37], sizes = [1, 575], strides = [1, 1]} : vector<1x612xf32> to vector<1x575xf32>
    %37 = vector.extract_strided_slice %17 {offsets = [0, 0], sizes = [1, 37], strides = [1, 1]} : vector<1x612xf32> to vector<1x37xf32>
    %38 = tpu.concatenate %36, %37 in 1 : vector<1x575xf32>, vector<1x37xf32> -> vector<1x612xf32>
    %39 = vector.extract_strided_slice %17 {offsets = [0, 38], sizes = [1, 574], strides = [1, 1]} : vector<1x612xf32> to vector<1x574xf32>
    %40 = vector.extract_strided_slice %17 {offsets = [0, 0], sizes = [1, 38], strides = [1, 1]} : vector<1x612xf32> to vector<1x38xf32>
    %41 = tpu.concatenate %39, %40 in 1 : vector<1x574xf32>, vector<1x38xf32> -> vector<1x612xf32>
    %42 = tpu.concatenate %17, %20, %23, %26, %29, %32, %35, %38, %41 in 0 : vector<1x612xf32>, vector<1x612xf32>, vector<1x612xf32>, vector<1x612xf32>, vector<1x612xf32>, vector<1x612xf32>, vector<1x612xf32>, vector<1x612xf32>, vector<1x612xf32> -> vector<9x612xf32>
    %cst_11 = arith.constant dense<0.000000e+00> : vector<2x612xf32>
    %43 = tpu.matmul %0, %42, %cst_11 {dimension_numbers = #tpu.dot_dimension_numbers<[1], [0], [0], [1], [0, 0, 1, 1], [], []>} : vector<2x9xf32>, vector<9x612xf32>, vector<2x612xf32> -> vector<2x612xf32>
    %44 = vector.broadcast %1 : vector<2x1xf32> to vector<2x612xf32>
    %45 = arith.addf %43, %44 : vector<2x612xf32>
    %46 = vector.shape_cast %45 : vector<2x612xf32> to vector<2x34x18xf32>
    %47 = vector.extract_strided_slice %46 {offsets = [0, 0, 0], sizes = [2, 32, 16], strides = [1, 1, 1]} : vector<2x34x18xf32> to vector<2x32x16xf32>
    %48 = vector.extract_strided_slice %47 {offsets = [0, 0, 0], sizes = [2, 31, 16], strides = [1, 1, 1]} : vector<2x32x16xf32> to vector<2x31x16xf32>
    %49 = vector.extract_strided_slice %47 {offsets = [0, 1, 0], sizes = [2, 31, 16], strides = [1, 1, 1]} : vector<2x32x16xf32> to vector<2x31x16xf32>
    %50 = arith.maximumf %48, %49 : vector<2x31x16xf32>
    %cst_12 = arith.constant 0.000000e+00 : f32
    %51 = vector.broadcast %cst_12 : f32 to vector<2x1x16xf32>
    %52 = tpu.concatenate %50, %51 in 1 : vector<2x31x16xf32>, vector<2x1x16xf32> -> vector<2x32x16xf32>
    %53 = vector.shape_cast %52 : vector<2x32x16xf32> to vector<2x16x2x16xf32>
    %54 = vector.extract_strided_slice %53 {offsets = [0, 0, 0, 0], sizes = [2, 16, 1, 16], strides = [1, 1, 1, 1]} : vector<2x16x2x16xf32> to vector<2x16x1x16xf32>
    %55 = vector.shape_cast %54 : vector<2x16x1x16xf32> to vector<2x16x16xf32>
    %cst_13 = arith.constant 0.000000e+00 : f32
    %56 = vector.broadcast %cst_13 : f32 to vector<2x16x16xf32>
    %57 = arith.maximumf %55, %56 : vector<2x16x16xf32>
    %58 = vector.shape_cast %57 : vector<2x16x16xf32> to vector<2x256xf32>
    %cst_14 = arith.constant dense<0.000000e+00> : vector<2xf32>
    %59 = vector.multi_reduction <add>, %58, %cst_14 [1] : vector<2x256xf32> to vector<2xf32>
    %60 = arith.addf %2, %59 : vector<2xf32>
    %61 = arith.mulf %58, %58 : vector<2x256xf32>
    %cst_15 = arith.constant dense<0.000000e+00> : vector<2xf32>
    %62 = vector.multi_reduction <add>, %61, %cst_15 [1] : vector<2x256xf32> to vector<2xf32>
    %63 = arith.addf %3, %62 : vector<2xf32>
    %64 = vector.shape_cast %58 : vector<2x256xf32> to vector<1x2x256xf32>
    %c0_16 = arith.constant 0 : index
    %c0_17 = arith.constant 0 : index
    %c0_18 = arith.constant 0 : index
    %65 = vector.load %arg6[%c0_16, %c0_17, %c0_18] : memref<1x2x256xf32, #tpu.memory_space<vmem>>, vector<1x2x256xf32>
    tpu.vector_store %arg6[%c0_16, %c0_17, %c0_18], %64 {strides = array<i32>} : memref<1x2x256xf32, #tpu.memory_space<vmem>>, vector<1x2x256xf32>,
    %66 = vector.shape_cast %60 : vector<2xf32> to vector<1x1x2xf32>
    %67 = vector.shape_cast %63 : vector<2xf32> to vector<1x1x2xf32>
    %68 = tpu.concatenate %66, %67 in 1 : vector<1x1x2xf32>, vector<1x1x2xf32> -> vector<1x2x2xf32>
    %c0_19 = arith.constant 0 : index
    %c0_20 = arith.constant 0 : index
    %c0_21 = arith.constant 0 : index
    %69 = vector.load %arg7[%c0_19, %c0_20, %c0_21] : memref<1x2x2xf32, #tpu.memory_space<vmem>>, vector<1x2x2xf32>
    tpu.vector_store %arg7[%c0_19, %c0_20, %c0_21], %68 {strides = array<i32>} : memref<1x2x2xf32, #tpu.memory_space<vmem>>, vector<1x2x2xf32>,
    return
  }
  func.func @transform_0(%arg0: i32) -> (i32, i32, i32) {
    %c0_i32 = arith.constant 0 : i32
    %c0_i32_0 = arith.constant 0 : i32
    %c0_i32_1 = arith.constant 0 : i32
    return %arg0, %c0_i32, %c0_i32_0 : i32, i32, i32
  }
  func.func @transform_1(%arg0: i32) -> i32 {
    %c0_i32 = arith.constant 0 : i32
    %c0_i32_0 = arith.constant 0 : i32
    return %c0_i32 : i32
  }
  func.func @transform_2(%arg0: i32) -> i32 {
    %c0_i32 = arith.constant 0 : i32
    %c0_i32_0 = arith.constant 0 : i32
    return %c0_i32 : i32
  }
  func.func @transform_3(%arg0: i32) -> (i32, i32) {
    %c0_i32 = arith.constant 0 : i32
    %c0_i32_0 = arith.constant 0 : i32
    %c0_i32_1 = arith.constant 0 : i32
    return %c0_i32, %c0_i32_0 : i32, i32
  }
  func.func @transform_4(%arg0: i32) -> (i32, i32) {
    %c0_i32 = arith.constant 0 : i32
    %c0_i32_0 = arith.constant 0 : i32
    %c0_i32_1 = arith.constant 0 : i32
    return %c0_i32, %c0_i32_0 : i32, i32
  }
  func.func @transform_5(%arg0: i32) -> (i32, i32, i32) {
    %c0_i32 = arith.constant 0 : i32
    %c0_i32_0 = arith.constant 0 : i32
    %c0_i32_1 = arith.constant 0 : i32
    return %arg0, %c0_i32, %c0_i32_0 : i32, i32, i32
  }
  func.func @transform_6(%arg0: i32) -> (i32, i32, i32) {
    %c0_i32 = arith.constant 0 : i32
    %c0_i32_0 = arith.constant 0 : i32
    %c0_i32_1 = arith.constant 0 : i32
    return %arg0, %c0_i32, %c0_i32_0 : i32, i32, i32
  }
}

</mosaic_0001>

<bundles_post_ra>
// kernel: tpu_custom_call.1
= control target key start
LH: loop header
LB: loop body
LE: loop exit
PB: predicated region body
PF: predicated region fallthrough
CT: control target
= control target key end

     0   :  { %s3927_s0 = inlined_call_operand.vmem [shape: f32[2,1,512], index: 0, kind: input, shape index: {}]   ;;  %s3928_s1 = inlined_call_operand.<no memory space> [shape: f32[1], index: 1, kind: input, shape index: {}]   ;;  %s3929_s2 = inlined_call_operand.<no memory space> [shape: f32[1], index: 2, kind: input, shape index: {}]   ;;  %s3930_s3 = inlined_call_operand.vmem [shape: f32[2,9], index: 3, kind: input, shape index: {}]   ;;  %s3931_s4 = inlined_call_operand.vmem [shape: f32[2,1], index: 4, kind: input, shape index: {}]   ;;  %s3932_s5 = inlined_call_operand.hbm [shape: f32[2,2,256], index: 5, kind: output, shape index: {0}]   ;;  %s3933_s6 = inlined_call_operand.hbm [shape: f32[2,2,2], index: 6, kind: output, shape index: {1}]  }
   0x1   :  { %12 = sst [smem:[#allocation2]] %s3928_s1 }
   0x2   :  { %13 = sst [smem:[#allocation3]] %s3929_s2 }
   0x3   :  { %14 = vsyncpa [#allocation5], 0 }
   0x4   :  { %16 = vsyncpa [#allocation5 + $0x1], 0 }
   0x5   :  { %17 = vsyncpa [#allocation7], 0 }
   0x6   :  { %19 = vsyncpa [#allocation7 + $0x1], 0  ;;  %s3072_s25 = smov 0   ;;  %s3074_s26 = smov 0  }
   0x7   :  { %s3076_s27 = smov 0   ;;  %s3078_s28 = smov 0  }
   0x8 LB: > { %s3093_s1 = sadd.s32 4294967295, %s2949_s28   ;;  %s2602_s2 = sadd.s32 4294967294, %s2949_s28   ;;  %s2949_s28 = sphi %s3078_s28, %s3962_s28   ;;  %s2945_s27 = sphi %s3076_s27, %s3961_s27   ;;  %s2941_s26 = sphi %s3074_s26, %s3960_s26   ;;  %s2937_s25 = sphi %s3072_s25, %s3959_s25  }
   0x9   : > { %s3097_s29 = sadd.s32 1, %s2949_s28   ;;  %s142_s30 = sadd.s32 1, %s2945_s27 }
   0xa   : > { %s139_s7 = ssub.s32 %s2949_s28, %s3097_s29  ;;  %p152_p0 = scmp.ne.s32.totalorder %s2945_s27, %s2941_s26 }
   0xb   : > { %p140_p1 = scmp.eq.s32.totalorder %s139_s7, 0  ;;  %p153_p2 = scmp.eq.s32.totalorder %s3093_s1, 1 }
   0xc   : > { %p158_p3 = scmp.ne.s32.totalorder %s2941_s26, %s2937_s25  ;;  %p159_p4 = scmp.eq.s32.totalorder %s2602_s2, 1 }
   0xd   : > { %s3108_s8 = scalar_select %p140_p1, %s2945_s27, %s142_s30  }
   0xe   : > { %p3110_p5 = por %p153_p2, %p152_p0  ;;  %p3114_p6 = por %p159_p4, %p158_p3 }
   0xf   : > { %p2605_p7 = scmp.ge.s32.totalorder %s2949_s28, 1  ;;  %p222_p8 = scmp.lt.s32.totalorder %s2949_s28, 3 }
  0x11   : > { %p223_p9 = pnand %p2605_p7, %p222_p8 }
  0x12   : > { %p256_p10 = scmp.lt.s32.totalorder (!%p223_p9), %s3093_s1, 1  ;;  %s263_s11 = sld [smem:[#allocation2]] (!%p223_p9)  ;;  %v2958_v5 = vmov (!%p223_p9), 0.0   ;;  %v2959_v6 = vmov (!%p223_p9), 1966171168   ;;  %v315_v8 = vlaneseq (!%p223_p9)  ;;  %vm516_vm0 = vcmask (!%p223_p9), 7168  }
  0x13   : > { %226 = sbr.rel (%p223_p9) target bundleno = 1406 (0x57e), region = 40  ;;  %s266_s12 = sld [smem:[#allocation3]] (!%p223_p9)  ;;  %1317 = vmatprep.mubr.f32.mxu0 (!%p223_p9), %v2958_v5  ;;  %1388 = vmatprep.mubr.f32.mxu1 (!%p223_p9), %v2958_v5  ;;  %v313_v7 = vunpack.c.l.s4 (!%p223_p9), %v2959_v6  ;;  %vm521_vm1 = vcmask (!%p223_p9), 138240   ;;  %vm530_vm2 = vcmask (!%p223_p9), 1040384   ;;  %vm881_vm3 = vcmask (!%p223_p9), 146432  }
  0x14   : > { %s2951_s18 = smov (!%p223_p9), 112   ;;  %s2952_s19 = smov (!%p223_p9), 80   ;;  %v3135_v10 = vshrl.u32 (!%p223_p9), %v315_v8, 7  ;;  %vm883_vm4 = vcmask (!%p223_p9), 293888   ;;  %vm885_vm5 = vcmask (!%p223_p9), 441344   ;;  %vm887_vm6 = vcmask (!%p223_p9), 588800  }
  0x15   : > { %s2953_s20 = smov (!%p223_p9), 96   ;;  %s3943_s21 = smov (!%p223_p9), 64   ;;  %v314_v9 = vunpack.c.0.s8 (!%p223_p9), %v313_v7  ;;  %vm889_vm7 = vcmask (!%p223_p9), 736256   ;;  %vm891_vm8 = vcmask (!%p223_p9), 883712   ;;  %vm893_vm9 = vcmask (!%p223_p9), 1031168  }
  0x16   : > { %s3937_s22 = smov (!%p223_p9), 48   ;;  %s3939_s23 = smov (!%p223_p9), 32   ;;  %vm923_vm10 = vcmask (!%p223_p9), 97280   ;;  %vm925_vm11 = vcmask (!%p223_p9), 244736   ;;  %vm937_vm12 = vcmask (!%p223_p9), 80896   ;;  %vm3934_vm13 = vcmask (!%p223_p9), 392192  }
  0x17   : > { %s3941_s24 = smov (!%p223_p9), 16   ;;  %v3138_v16 = vsub.s32 (!%p223_p9), %v314_v9, %v3135_v10  ;;  %s2960_s2 = smov (!%p223_p9), 1   ;;  %vm939_vm14 = vcmask (!%p223_p9), 228352   ;;  %vm909_vm15 = vcmask (!%p223_p9), 113664  }
  0x18   : > { %v264_v1 = vstv (!%p223_p9), %s263_s11  ;;  %s2963_s30 = smov (!%p223_p9), 18   ;;  %s2964_s7 = smov (!%p223_p9), 36  }
  0x19   : > { %v267_v3 = vstv (!%p223_p9), %s266_s12  ;;  %s2965_s11 = smov (!%p223_p9), 72   ;;  %s2966_s12 = smov (!%p223_p9), 34  }
  0x1a   : > { %s257_s13 = scalar_select %p256_p10, %s3093_s1, 1 }
  0x1b   : > { %s2969_s15 = smov 54   ;;  %s2970_s16 = smov 90  }
  0x1c   : > { %s2608_s14 = sshll.u32 %s257_s13, 2  ;;  %s2967_s13 = smov 52  }
  0x1d   : > { %s259_s17 = scalar_lea.vmem %s3927_s0, %s2608_s14  ;;  %s2968_s14 = smov 50  }
  0x1e   : > { %v262_v0 = vld [vmem:[%s259_s17] sm:$0xf]  ;;  %s2971_s17 = smov 68  }
  0x1f   : > { %v265_v2 = vmul.f32 %v264_v1, %v262_v0 }
  0x21   : > { %v268_v4 = vadd.f32 %v267_v3, %v265_v2 }
  0x23   : > { %271 = vrot.lane.b32.xlu0 %v268_v4, %s2951_s18  ;;  %277 = vrot.lane.b32.xlu1 %v268_v4, %s2952_s19  ;;  %v270_v13 = vrot.slane %v268_v4, 1  ;;  %v292_v15 = vrot.slane %v268_v4, 2  ;;  %v300_v18 = vrot.slane %v268_v4, 3 }
  0x27   : > { %274 = vrot.lane.b32.xlu0 %v268_v4, %s2953_s20  ;;  %280 = vrot.lane.b32.xlu1 %v268_v4, %s3943_s21 }
  0x2b   : > { %283 = vrot.lane.b32.xlu0 %v268_v4, %s3937_s22  ;;  %286 = vrot.lane.b32.xlu1 %v268_v4, %s3939_s23 }
  0x2f   : > { %289 = vrot.lane.b32.xlu0 %v268_v4, %s3941_s24 }
  0x95   : > { %v272_v11 = vpop.permute.xlu0 %271  ;;  %v278_v12 = vpop.permute.xlu1 %277 }
  0x96   : > { %v273_v14 = vrot.slane %v272_v11, 1  ;;  %v293_v17 = vrot.slane %v272_v11, 2  ;;  %v301_v19 = vrot.slane %v272_v11, 3  ;;  %v308_v20 = vcombine.low %v268_v4, %v272_v11 }
  0x97   : > { %v279_v21 = vrot.slane %v278_v12, 1  ;;  %v295_v25 = vrot.slane %v278_v12, 2  ;;  %v303_v27 = vrot.slane %v278_v12, 3 }
  0x98   : > { %v357_v24 = vcombine.low %v270_v13, %v273_v14  ;;  %v406_v31 = vcombine.low %v292_v15, %v293_v17  ;;  %v455_v32 = vcombine.low %v300_v18, %v301_v19  ;;  %v318_v33 = vrot.slane %v308_v20, %v3138_v16 }
  0x99   : > { %v275_v22 = vpop.permute.xlu0 %274  ;;  %v281_v23 = vpop.permute.xlu1 %280 }
  0x9a   : > { %v276_v26 = vrot.slane %v275_v22, 1  ;;  %v294_v28 = vrot.slane %v275_v22, 2  ;;  %v302_v29 = vrot.slane %v275_v22, 3  ;;  %v309_v30 = vcombine.low %v275_v22, %v278_v12 }
  0x9b   : > { %v282_v35 = vrot.slane %v281_v23, 1  ;;  %v296_v36 = vrot.slane %v281_v23, 2  ;;  %v304_v37 = vrot.slane %v281_v23, 3  ;;  %v367_v43 = vrot.slane %v357_v24, %v3138_v16 }
  0x9c   : > { %v358_v34 = vcombine.low %v276_v26, %v279_v21  ;;  %v407_v44 = vcombine.low %v294_v28, %v295_v25  ;;  %v456_v45 = vcombine.low %v302_v29, %v303_v27  ;;  %v325_v47 = vrot.slane %v309_v30, %v3138_v16 }
  0x9d   : > { %v284_v38 = vpop.permute.xlu0 %283  ;;  %v287_v39 = vpop.permute.xlu1 %286  ;;  %v416_v51 = vrot.slane %v406_v31, %v3138_v16  ;;  %v465_v19 = vrot.slane %v455_v32, %v3138_v16 }
  0x9e   : > { %v285_v40 = vrot.slane %v284_v38, 1  ;;  %v297_v41 = vrot.slane %v284_v38, 2  ;;  %v305_v42 = vrot.slane %v284_v38, 3  ;;  %v310_v46 = vcombine.low %v281_v23, %v284_v38 }
  0x9f   : > { %v288_v48 = vrot.slane %v287_v39, 1  ;;  %v298_v49 = vrot.slane %v287_v39, 2  ;;  %v306_v50 = vrot.slane %v287_v39, 3  ;;  %v374_v56 = vrot.slane %v358_v34, %v3138_v16 }
  0xa0   : > { %v359_v52 = vcombine.low %v282_v35, %v285_v40  ;;  %v408_v53 = vcombine.low %v296_v36, %v297_v41  ;;  %v457_v54 = vcombine.low %v304_v37, %v305_v42  ;;  %v332_v61 = vrot.slane %v310_v46, %v3138_v16 }
  0xa1   : > { %v290_v55 = vpop.permute.xlu0 %289  ;;  %v340_v62 = vcombine.low %v318_v33, %v325_v47  ;;  %v423_v63 = vrot.slane %v407_v44, %v3138_v16  ;;  %v472_v0 = vrot.slane %v456_v45, %v3138_v16  ;;  %v389_v7 = vcombine.low %v367_v43, %v374_v56 }
  0xa2   : > { %v291_v57 = vrot.slane %v290_v55, 1  ;;  %v299_v58 = vrot.slane %v290_v55, 2  ;;  %v307_v59 = vrot.slane %v290_v55, 3  ;;  %v311_v60 = vcombine.low %v287_v39, %v290_v55 }
  0xa3   : > { %v381_v6 = vrot.slane %v359_v52, %v3138_v16  ;;  %v430_v9 = vrot.slane %v408_v53, %v3138_v16  ;;  %v479_v11 = vrot.slane %v457_v54, %v3138_v16  ;;  %v348_v17 = vrot.slane %v340_v62, %v3138_v16 }
  0xa4   : > { %v360_v1 = vcombine.low %v288_v48, %v291_v57  ;;  %v409_v2 = vcombine.low %v298_v49, %v299_v58  ;;  %v458_v3 = vcombine.low %v306_v50, %v307_v59  ;;  %v339_v4 = vrot.slane %v311_v60, %v3138_v16 }
  0xa5   : > { %v438_v18 = vcombine.low %v416_v51, %v423_v63  ;;  %v397_v24 = vrot.slane %v389_v7, %v3138_v16  ;;  %v487_v28 = vcombine.low %v465_v19, %v472_v0  ;;  %v2961_v35 = vmov 1983009808  }
  0xa6   : > { %v341_v12 = vcombine.low %v332_v61, %v339_v4  ;;  %v388_v13 = vrot.slane %v360_v1, %v3138_v16  ;;  %v437_v14 = vrot.slane %v409_v2, %v3138_v16  ;;  %v486_v15 = vrot.slane %v458_v3, %v3138_v16 }
  0xa7   : > { %v446_v30 = vrot.slane %v438_v18, %v3138_v16  ;;  %v495_v33 = vrot.slane %v487_v28, %v3138_v16  ;;  %v546_v36 = vunpack.c.l.s4 %v2961_v35  ;;  %v2962_v37 = vmov 1934713408  }
  0xa8   : > { %v355_v20 = vrot.slane %v341_v12, %v3138_v16  ;;  %v390_v21 = vcombine.low %v381_v6, %v388_v13  ;;  %v439_v22 = vcombine.low %v430_v9, %v437_v14  ;;  %v488_v23 = vcombine.low %v479_v11, %v486_v15 }
  0xa9   : > { %v561_v38 = vunpack.c.l.s4 %v2962_v37  ;;  %v547_v39 = vunpack.c.0.s8 %v546_v36 }
  0xaa   : > { %v356_v25 = vcombine.low %v348_v17, %v355_v20  ;;  %v404_v26 = vrot.slane %v390_v21, %v3138_v16  ;;  %v453_v27 = vrot.slane %v439_v22, %v3138_v16  ;;  %v502_v31 = vrot.slane %v488_v23, %v3138_v16 }
  0xab   : > { %v562_v40 = vunpack.c.0.s8 %v561_v38  ;;  %v3166_v43 = vsub.s32 %v547_v39, %v3135_v10 }
  0xac   : > { %504 = vrot.lane.b32.xlu1 %v356_v25, %s2960_s2  ;;  %v405_v29 = vcombine.low %v397_v24, %v404_v26  ;;  %v454_v32 = vcombine.low %v446_v30, %v453_v27  ;;  %v503_v34 = vcombine.low %v495_v33, %v502_v31 }
  0xad   : > { %v3171_v47 = vsub.s32 %v562_v40, %v3135_v10 }
  0xae   : > { %506 = vrot.lane.b32.xlu0 %v405_v29, %s2960_s2 }
  0xb0   : > { %508 = vrot.lane.b32.xlu1 %v454_v32, %s2960_s2 }
  0xb2   : > { %510 = vrot.lane.b32.xlu0 %v503_v34, %s2960_s2  ;;  %s2972_s2 = smov 104  }
 0x11e   : > { %v505_v41 = vpop.permute.xlu1 %504 }
 0x11f   : > { %v517_v42 = vsel %vm516_vm0, 0.0, %v505_v41 }
 0x120   : > { %v522_v16 = vsel %vm521_vm1, %v517_v42, 0.0  ;;  %v507_v44 = vpop.permute.xlu0 %506 }
 0x121   : > { %v531_v45 = vrot.slane %v522_v16, 7  ;;  %v518_v46 = vsel %vm516_vm0, 0.0, %v507_v44 }
 0x122   : > { %v523_v48 = vsel %vm521_vm1, %v518_v46, 0.0  ;;  %v509_v49 = vpop.permute.xlu1 %508 }
 0x123   : > { %v543_v50 = vsel %vm530_vm2, 0.0, %v531_v45  ;;  %v532_v51 = vrot.slane %v523_v48, 7  ;;  %v519_v52 = vsel %vm516_vm0, 0.0, %v509_v49 }
 0x124   : > { %v551_v53 = vrot.slane %v543_v50, %v3166_v43  ;;  %v524_v54 = vsel %vm521_vm1, %v519_v52, 0.0  ;;  %v511_v55 = vpop.permute.xlu0 %510  ;;  %v544_v62 = vcombine.high %v543_v50, %v2958_v5 }
 0x125   : > { %v534_v56 = vrot.slane %v524_v54, 7  ;;  %v520_v57 = vsel %vm516_vm0, 0.0, %v511_v55  ;;  %v533_v58 = vsel %vm530_vm2, %v531_v45, %v532_v51  ;;  %vm941_vm0 = vcmask 375808  }
 0x126   : > { %v3181_v59 = vsel %vm521_vm1, %v520_v57, 0.0  ;;  %v3184_v60 = vrot.slane %v551_v53, %v3171_v47  ;;  %v600_v61 = vrot.slane %v533_v58, %v3166_v43  ;;  %v559_v4 = vcombine.high %v551_v53, %v2958_v5 }
 0x127   : > { %v536_v63 = vrot.slane %v3181_v59, 7  ;;  %v535_v0 = vsel %vm530_vm2, %v532_v51, %v534_v56  ;;  %v558_v11 = vrot.slane %v544_v62, %v3166_v43  ;;  %v593_v19 = vcombine.high %v533_v58, %v2958_v5 }
 0x128   : > { %v589_v1 = vcombine.high %v3184_v60, %v2958_v5  ;;  %v615_v2 = vrot.slane %v600_v61, %v3171_v47  ;;  %v649_v3 = vrot.slane %v535_v0, %v3166_v43  ;;  %v573_v9 = vrot.slane %v559_v4, %v3171_v47 }
 0x129   : > { %v537_v6 = vsel %vm530_vm2, %v534_v56, %v536_v63  ;;  %v581_v13 = vrot.slane %v558_v11, %v3171_v47  ;;  %v608_v15 = vcombine.high %v600_v61, %v2958_v5  ;;  %v642_v23 = vcombine.high %v535_v0, %v2958_v5 }
 0x12a   : > { %750 = vrot.lane.b32.xlu1 %v589_v1, %s2963_s30  ;;  %778 = vrot.lane.b32.xlu0 %v615_v2, %s3941_s24  ;;  %v664_v7 = vrot.slane %v649_v3, %v3171_v47  ;;  %v698_v12 = vrot.slane %v537_v6, %v3166_v43  ;;  %v638_v17 = vcombine.high %v615_v2, %v2958_v5  ;;  %s2973_s30 = smov 88   ;;  %v740_v54 = vsel %vm530_vm2, %v536_v63, 0.0  ;;  %s3013_s24 = smov 8  }
 0x12b   : > { %v622_v18 = vrot.slane %v608_v15, %v3171_v47  ;;  %v590_v21 = vcombine.high %v573_v9, %v2958_v5  ;;  %v657_v22 = vcombine.high %v649_v3, %v2958_v5  ;;  %v591_v24 = vcombine.high %v581_v13, %v2958_v5 }
 0x12c   : > { %v713_v14 = vrot.slane %v698_v12, %v3171_v47  ;;  %v687_v20 = vcombine.high %v664_v7, %v2958_v5  ;;  %v656_v26 = vrot.slane %v642_v23, %v3166_v43  ;;  %v607_v27 = vrot.slane %v593_v19, %v3166_v43 }
 0x12d   : > { %v671_v25 = vrot.slane %v657_v22, %v3171_v47  ;;  %v691_v28 = vcombine.high %v537_v6, %v2958_v5  ;;  %v706_v34 = vcombine.high %v698_v12, %v2958_v5  ;;  %v574_v35 = vcombine.high %v558_v11, %v2958_v5 }
 0x12e   : > { %810 = vrot.lane.b32.xlu1 %v664_v7, %s3939_s23  ;;  %754 = vrot.lane.b32.xlu0 %v573_v9, %s2964_s7  ;;  %v679_v29 = vrot.slane %v656_v26, %v3171_v47  ;;  %v630_v30 = vrot.slane %v607_v27, %v3171_v47  ;;  %v736_v32 = vcombine.high %v713_v14, %v2958_v5  ;;  %s2974_s7 = smov 66   ;;  %vm929_vm1 = vcmask 539648   ;;  %s3012_s23 = smov 24  }
 0x12f   : > { %v705_v31 = vrot.slane %v691_v28, %v3166_v43  ;;  %v720_v36 = vrot.slane %v706_v34, %v3171_v47  ;;  %v588_v37 = vrot.slane %v574_v35, %v3171_v47  ;;  %v639_v39 = vcombine.high %v622_v18, %v2958_v5 }
 0x130   : > { %v623_v40 = vcombine.high %v607_v27, %v2958_v5  ;;  %v689_v42 = vcombine.high %v679_v29, %v2958_v5  ;;  %v672_v16 = vcombine.high %v656_v26, %v2958_v5  ;;  %v688_v45 = vcombine.high %v671_v25, %v2958_v5 }
 0x131   : > { %v728_v33 = vrot.slane %v705_v31, %v3171_v47  ;;  %v592_v38 = vcombine.high %v588_v37, %v2958_v5  ;;  %v721_v46 = vcombine.high %v705_v31, %v2958_v5  ;;  %v640_v48 = vcombine.high %v630_v30, %v2958_v5 }
 0x132   : > { %762 = vrot.lane.b32.xlu0 %v581_v13, %s2965_s11  ;;  %842 = vrot.lane.b32.xlu1 %v713_v14, %s3937_s22  ;;  %s2975_s11 = smov 120   ;;  %v637_v41 = vrot.slane %v623_v40, %v3171_v47  ;;  %v686_v44 = vrot.slane %v672_v16, %v3171_v47  ;;  %v737_v55 = vcombine.high %v720_v36, %v2958_v5  ;;  %s3011_s22 = smov 42  }
 0x133   : > { %v735_v49 = vrot.slane %v721_v46, %v3171_v47  ;;  %v738_v50 = vcombine.high %v728_v33, %v2958_v5  ;;  %v747_v56 = vrot.slane %v740_v54, %v3171_v47 }
 0x134   : > { %v641_v51 = vcombine.high %v637_v41, %v2958_v5  ;;  %v690_v52 = vcombine.high %v686_v44, %v2958_v5 }
 0x135   : > { %v739_v53 = vcombine.high %v735_v49, %v2958_v5  ;;  %v748_v57 = vcombine.high %v747_v56, %v2958_v5 }
 0x136   : > { %782 = vrot.lane.b32.xlu0 %v638_v17, %s2966_s12  ;;  %786 = vrot.lane.b32.xlu1 %v622_v18, %s2967_s13  ;;  %s2976_s12 = smov 84   ;;  %s2977_s13 = smov 108  }
 0x13a   : > { %814 = vrot.lane.b32.xlu0 %v687_v20, %s2968_s14  ;;  %758 = vrot.lane.b32.xlu1 %v590_v21, %s2969_s15  ;;  %s2978_s14 = smov 126   ;;  %s2979_s15 = smov 70  }
 0x13e   : > { %766 = vrot.lane.b32.xlu0 %v591_v24, %s2970_s16  ;;  %818 = vrot.lane.b32.xlu1 %v671_v25, %s2971_s17  ;;  %s2980_s17 = smov 124  }
 0x142   : > { %826 = vrot.lane.b32.xlu0 %v679_v29, %s2972_s2  ;;  %794 = vrot.lane.b32.xlu1 %v630_v30, %s2973_s30  ;;  %s2981_s2 = smov 122   ;;  %s2982_s30 = smov 12  }
 0x146   : > { %846 = vrot.lane.b32.xlu1 %v736_v32, %s2974_s7  ;;  %858 = vrot.lane.b32.xlu0 %v728_v33, %s2975_s11  ;;  %s2983_s7 = smov 86   ;;  %s2984_s11 = smov 106  }
 0x14a   : > { %850 = vrot.lane.b32.xlu1 %v720_v36, %s2976_s12  ;;  %770 = vrot.lane.b32.xlu0 %v588_v37, %s2977_s13  ;;  %s2985_s12 = smov 28  }
 0x14e   : > { %774 = vrot.lane.b32.xlu1 %v592_v38, %s2978_s14  ;;  %790 = vrot.lane.b32.xlu0 %v639_v39, %s2979_s15  ;;  %s2986_s15 = smov 10  }
 0x152   : > { %802 = vrot.lane.b32.xlu1 %v637_v41, %s2980_s17  ;;  %830 = vrot.lane.b32.xlu0 %v689_v42, %s2981_s2  ;;  %s2987_s17 = smov 14   ;;  %s2988_s2 = smov 30  }
 0x156   : > { %834 = vrot.lane.b32.xlu1 %v686_v44, %s2982_s30  ;;  %822 = vrot.lane.b32.xlu0 %v688_v45, %s2983_s7  ;;  %s2989_s30 = smov 46   ;;  %s2990_s7 = smov 102  }
 0x15a   : > { %798 = vrot.lane.b32.xlu1 %v640_v48, %s2984_s11  ;;  %866 = vrot.lane.b32.xlu0 %v735_v49, %s2985_s12  ;;  %s2991_s11 = smov 82   ;;  %s2992_s12 = smov 81  }
 0x15e   : > { %862 = vrot.lane.b32.xlu1 %v738_v50, %s2986_s15  ;;  %806 = vrot.lane.b32.xlu0 %v641_v51, %s2987_s17  ;;  %s2993_s15 = smov 99   ;;  %s2994_s17 = smov 98  }
 0x162   : > { %838 = vrot.lane.b32.xlu1 %v690_v52, %s2988_s2  ;;  %870 = vrot.lane.b32.xlu0 %v739_v53, %s2989_s30  ;;  %s2995_s2 = smov 127   ;;  %s2996_s30 = smov 110  }
 0x166   : > { %854 = vrot.lane.b32.xlu1 %v737_v55, %s2990_s7  ;;  %874 = vrot.lane.b32.xlu0 %v747_v56, %s3943_s21  ;;  %s2997_s7 = smov 92  }
 0x16a   : > { %878 = vrot.lane.b32.xlu1 %v748_v57, %s2991_s11 }
 0x19c   : > { %v751_v58 = vpop.permute.xlu1 %750  ;;  %v3255_v59 = vpop.permute.xlu0 %778 }
 0x19d   : > { %v882_v14 = vsel %vm881_vm3, %v3184_v60, %v751_v58  ;;  %vm943_vm3 = vcmask 523264  }
 0x1a0   : > { %v3257_v61 = vpop.permute.xlu1 %810  ;;  %v755_v62 = vpop.permute.xlu0 %754 }
 0x1a1   : > { %v884_v15 = vsel %vm883_vm4, %v882_v14, %v755_v62  ;;  %vm945_vm4 = vcmask 670720  }
 0x1a4   : > { %v843_v63 = vpop.permute.xlu1 %842  ;;  %v763_v0 = vpop.permute.xlu0 %762 }
 0x1a8   : > { %v3259_v1 = vpop.permute.xlu1 %786  ;;  %v3261_v2 = vpop.permute.xlu0 %782 }
 0x1ac   : > { %v759_v3 = vpop.permute.xlu1 %758  ;;  %v3263_v4 = vpop.permute.xlu0 %814 }
 0x1ad   : > { %v886_v17 = vsel %vm885_vm5, %v884_v15, %v759_v3  ;;  %vm3936_vm5 = vcmask 261120  }
 0x1ae   : > { %v888_v20 = vsel %vm887_vm6, %v886_v17, %v763_v0  ;;  %vm895_vm6 = vcmask 130048  }
 0x1b0   : > { %v3265_v6 = vpop.permute.xlu1 %818  ;;  %v767_v7 = vpop.permute.xlu0 %766 }
 0x1b1   : > { %v890_v21 = vsel %vm889_vm7, %v888_v20, %v767_v7 }
 0x1b4   : > { %v3267_v9 = vpop.permute.xlu1 %794  ;;  %v3269_v11 = vpop.permute.xlu0 %826 }
 0x1b8   : > { %v847_v12 = vpop.permute.xlu1 %846  ;;  %v3271_v13 = vpop.permute.xlu0 %858 }
 0x1bc   : > { %v3274_v18 = vpop.permute.xlu1 %850  ;;  %v771_v19 = vpop.permute.xlu0 %770 }
 0x1bd   : > { %v892_v22 = vsel %vm891_vm8, %v890_v21, %v771_v19 }
 0x1c0   : > { %v775_v23 = vpop.permute.xlu1 %774  ;;  %v3278_v24 = vpop.permute.xlu0 %790 }
 0x1c1   : > { %v3281_v25 = vsel %vm893_vm9, %v892_v22, %v775_v23  ;;  %v896_v50 = vsel %vm895_vm6, %v775_v23, %v3255_v59 }
 0x1c2   : > { %1029 = vrot.lane.b32.xlu0 %v3281_v25, %s2992_s12  ;;  %968 = vrot.lane.b32.xlu1 %v3281_v25, %s2993_s15  ;;  %s2998_s12 = smov 109   ;;  %s2999_s15 = smov 91  }
 0x1c4   : > { %v3285_v60 = vpop.permute.xlu1 %802  ;;  %v3287_v26 = vpop.permute.xlu0 %830 }
 0x1c6   : > { %1049 = vrot.lane.b32.xlu0 %v3281_v25, %s2952_s19  ;;  %988 = vrot.lane.b32.xlu1 %v3281_v25, %s2994_s17 }
 0x1c8   : > { %v835_v27 = vpop.permute.xlu1 %834  ;;  %v3293_v28 = vpop.permute.xlu0 %822 }
 0x1c9   : > { %v924_v35 = vsel %vm923_vm10, %v3287_v26, %v835_v27  ;;  %vm931_vm10 = vcmask 687104  }
 0x1ca   : > { %1009 = vrot.lane.b32.xlu1 %v3281_v25, %s2991_s11 }
 0x1cc   : > { %v3297_v29 = vpop.permute.xlu1 %798  ;;  %v867_v30 = vpop.permute.xlu0 %866 }
 0x1d0   : > { %v863_v31 = vpop.permute.xlu1 %862  ;;  %v807_v32 = vpop.permute.xlu0 %806 }
 0x1d1   : > { %v938_v37 = vsel %vm937_vm12, %v3271_v13, %v863_v31  ;;  %v910_v42 = vsel %vm909_vm15, %v3285_v60, %v807_v32  ;;  %vm897_vm12 = vcmask 277504   ;;  %vm915_vm15 = vcmask 556032  }
 0x1d2   : > { %v940_v41 = vsel %vm939_vm14, %v938_v37, %v867_v30  ;;  %v912_v49 = vsel %vm3936_vm5, %v910_v42, %v3257_v61  ;;  %vm933_vm14 = vcmask 834560   ;;  %v898_v53 = vsel %vm897_vm12, %v896_v50, %v3261_v2 }
 0x1d3   : > { %vm903_vm12 = vcmask 719872   ;;  %vm1084_vm5 = vcmask 744448  }
 0x1d4   : > { %v839_v33 = vpop.permute.xlu1 %838  ;;  %v871_v34 = vpop.permute.xlu0 %870 }
 0x1d5   : > { %v926_v36 = vsel %vm925_vm11, %v924_v35, %v839_v33  ;;  %v942_v16 = vsel %vm941_vm0, %v940_v41, %v871_v34  ;;  %vm913_vm11 = vcmask 408576   ;;  %vm899_vm0 = vcmask 424960  }
 0x1d6   : > { %v928_v39 = vsel %vm3934_vm13, %v926_v36, %v843_v63  ;;  %v914_v52 = vsel %vm913_vm11, %v912_v49, %v3263_v4  ;;  %vm917_vm13 = vcmask 703488   ;;  %v900_v56 = vsel %vm899_vm0, %v898_v53, %v3259_v1 }
 0x1d7   : > { %v930_v44 = vsel %vm929_vm1, %v928_v39, %v847_v12  ;;  %vm935_vm1 = vcmask 982016   ;;  %v916_v55 = vsel %vm915_vm15, %v914_v52, %v3265_v6  ;;  %vm919_vm11 = vcmask 850944   ;;  %v261_v6 = vld [vmem:[%s3931_s4] sm:$0x3] }
 0x1d8   : > { %v855_v38 = vpop.permute.xlu1 %854  ;;  %v875_v40 = vpop.permute.xlu0 %874  ;;  %v932_v51 = vsel %vm931_vm10, %v930_v44, %v3274_v18  ;;  %vm901_vm10 = vcmask 572416   ;;  %v918_v58 = vsel %vm917_vm13, %v916_v55, %v3293_v28  ;;  %vm921_vm15 = vcmask 998400  }
 0x1d9   : > { %v944_v45 = vsel %vm943_vm3, %v942_v16, %v875_v40  ;;  %v934_v54 = vsel %vm933_vm14, %v932_v51, %v855_v38  ;;  %v902_v59 = vsel %vm901_vm10, %v900_v56, %v3278_v24  ;;  %vm905_vm14 = vcmask 867328  }
 0x1da   : > { %v3325_v57 = vsel %vm935_vm1, %v934_v54, %v3271_v13  ;;  %v920_v62 = vsel %vm919_vm11, %v918_v58, %v3269_v11  ;;  %v904_v63 = vsel %vm903_vm12, %v902_v59, %v3267_v9  ;;  %vm907_vm0 = vcmask 1014784  }
 0x1db   : > { %v2774_v61 = vpack.i.bf16 %v3325_v57, %v3281_v25  ;;  %v906_v0 = vsel %vm905_vm14, %v904_v63, %v3297_v29  ;;  %v3342_v1 = vsel %vm921_vm15, %v920_v62, %v3287_v26  ;;  %v3002_v4 = vmov 0  }
 0x1dc   : > { %v879_v46 = vpop.permute.xlu1 %878  ;;  %v3347_v2 = vsel %vm907_vm0, %v906_v0, %v3285_v60  ;;  %2854 = vset.pattern.permute.xlu0 %v3002_v4  ;;  %vm971_vm13 = vcmask 809984   ;;  %vm991_vm1 = vcmask 801792   ;;  %vm962_vm10 = vcmask 1039360  }
 0x1dd   : > { %v3305_v48 = vsel %vm945_vm4, %v944_v45, %v879_v46  ;;  %v2809_v3 = vpack.i.bf16 %v3342_v1, %v3347_v2  ;;  %vm1032_vm11 = vcmask 662528   ;;  %vm3935_vm12 = vcmask 654336  }
 0x1de   : > { %981 = vrot.lane.b32.xlu0 %v3305_v48, %s2978_s14  ;;  %960 = vrot.lane.b32.xlu1 %v3305_v48, %s2995_s2  ;;  %vm1197_vm14 = vcmask 1041408   ;;  %vm1203_vm15 = vcmask 1042432   ;;  %vm1023_vm0 = vcmask 891904  }
 0x1e2   : > { %1001 = vrot.lane.b32.xlu0 %v3305_v48, %s2996_s30  ;;  %1062 = vrot.lane.b32.xlu1 %v3305_v48, %s2997_s7 }
 0x1e6   : > { %1021 = vrot.lane.b32.xlu0 %v3305_v48, %s2998_s12  ;;  %1082 = vrot.lane.b32.xlu1 %v3305_v48, %s2999_s15 }
 0x1ea   : > { %1042 = vrot.lane.b32.xlu0 %v3305_v48, %s2977_s13  ;;  %2775 = vrot.lane.b32.xlu1 %v2774_v61, %s2995_s2 }
 0x1ee   : > { %2785 = vrot.lane.b32.xlu0 %v2774_v61, %s2996_s30  ;;  %2780 = vrot.lane.b32.xlu1 %v2774_v61, %s2978_s14 }
 0x1f2   : > { %2810 = vrot.lane.b32.xlu0 %v2809_v3, %s2995_s2  ;;  %2790 = vrot.lane.b32.xlu1 %v2774_v61, %s2998_s12  ;;  %s3001_s2 = smov 62  }
 0x1f6   : > { %2815 = vrot.lane.b32.xlu0 %v2809_v3, %s2978_s14  ;;  %2795 = vrot.lane.b32.xlu1 %v2774_v61, %s2977_s13  ;;  %s3000_s14 = smov 63  }
 0x1fa   : > { %2820 = vrot.lane.b32.xlu0 %v2809_v3, %s2996_s30  ;;  %2800 = vrot.lane.b32.xlu1 %v2774_v61, %s2997_s7 }
 0x1fe   : > { %2830 = vrot.lane.b32.xlu0 %v2774_v61, %s2970_s16  ;;  %2805 = vrot.lane.b32.xlu1 %v2774_v61, %s2999_s15 }
 0x202   : > { %2835 = vrot.lane.b32.xlu0 %v2809_v3, %s2977_s13  ;;  %2825 = vrot.lane.b32.xlu1 %v2809_v3, %s2998_s12  ;;  %s3007_s13 = smov 4   ;;  %s3008_s12 = smov 114  }
 0x206   : > { %2840 = vrot.lane.b32.xlu0 %v2809_v3, %s2997_s7  ;;  %1070 = vrot.lane.b32.xlu1 %v3281_v25, %s3943_s21  ;;  %s3014_s21 = smov 2  }
 0x20a   : > { %2845 = vrot.lane.b32.xlu0 %v2809_v3, %s2999_s15  ;;  %1090 = vrot.lane.b32.xlu1 %v3281_v25, %s3000_s14  ;;  %s3006_s14 = smov 6   ;;  %s3010_s15 = smov 60  }
 0x20e   : > { %2850 = vrot.lane.b32.xlu0 %v2809_v3, %s2970_s16  ;;  %1110 = vrot.lane.b32.xlu1 %v3281_v25, %s3001_s2 }
 0x212   : > { %1103 = vrot.lane.b32.xlu0 %v3305_v48, %s2970_s16  ;;  %s3009_s16 = smov 78  }
 0x216   : > { %1235 = vperm.xlu0 %2854, %v261_v6  }
 0x234   : > { %v969_v7 = vpop.permute.xlu1 %968  ;;  %v1030_v9 = vpop.permute.xlu0 %1029 }
 0x238   : > { %v989_v11 = vpop.permute.xlu1 %988  ;;  %v1050_v12 = vpop.permute.xlu0 %1049 }
 0x23c   : > { %v1010_v13 = vpop.permute.xlu1 %1009 }
 0x250   : > { %v961_v14 = vpop.permute.xlu1 %960  ;;  %v982_v15 = vpop.permute.xlu0 %981 }
 0x251   : > { %v972_v21 = vsel %vm971_vm13, %v961_v14, %v969_v7  ;;  %v992_v60 = vsel %vm991_vm1, %v982_v15, %v989_v11  ;;  %vm1064_vm13 = vcmask 752640   ;;  %vm1209_vm1 = vcmask 1043456  }
 0x252   : > { %v1120_v24 = vrot.slane %v972_v21, 7  ;;  %v1131_v30 = vrot.slane %v992_v60, 6 }
 0x254   : > { %v3374_v17 = vpop.permute.xlu1 %1062  ;;  %v1002_v18 = vpop.permute.xlu0 %1001  ;;  %v1196_v32 = vsel %vm530_vm2, %v3305_v48, %v1120_v24 }
 0x255   : > { %v1012_v27 = vsel %vm945_vm4, %v1002_v18, %v1010_v13  ;;  %vm1003_vm4 = vcmask 900096   ;;  %v1202_v41 = vsel %vm1197_vm14, %v1196_v32, %v1131_v30 }
 0x256   : > { %v1142_v33 = vrot.slane %v1012_v27, 5 }
 0x258   : > { %v3376_v19 = vpop.permute.xlu1 %1082  ;;  %v1022_v20 = vpop.permute.xlu0 %1021  ;;  %v3395_v45 = vsel %vm1203_vm15, %v1202_v41, %v1142_v33 }
 0x259   : > { %v3384_v35 = vsel %vm1032_vm11, %v1022_v20, %v1030_v9  ;;  %vm1215_vm11 = vcmask 1044480  }
 0x25a   : > { %v1153_v46 = vrot.slane %v3384_v35, 4 }
 0x25c   : > { %v2776_v22 = vpop.permute.xlu1 %2775  ;;  %v1043_v23 = vpop.permute.xlu0 %1042 }
 0x25d   : > { %v2778_v26 = vunpack.i.h.bf16 %v2776_v22  ;;  %v3390_v39 = vsel %vm3935_vm12, %v1043_v23, %v1050_v12  ;;  %v2777_v49 = vunpack.i.l.bf16 %v2776_v22  ;;  %vm1221_vm12 = vcmask 1045504  }
 0x25e   : > { %v1164_v50 = vrot.slane %v3390_v39, 3 }
 0x25f   : > { %v966_v34 = vsel %vm962_vm10, %v2778_v26, %v961_v14 }
 0x260   : > { %v2781_v28 = vpop.permute.xlu1 %2780  ;;  %v3379_v29 = vpop.permute.xlu0 %2785  ;;  %v1119_v42 = vrot.slane %v966_v34, 7 }
 0x261   : > { %v2783_v31 = vunpack.i.h.bf16 %v2781_v28  ;;  %v2788_v36 = vunpack.i.h.bf16 %v3379_v29  ;;  %v2782_v51 = vunpack.i.l.bf16 %v2781_v28  ;;  %v2787_v62 = vunpack.i.l.bf16 %v3379_v29 }
 0x262   : > { %v1195_v61 = vsel %vm530_vm2, %v3325_v57, %v1119_v42 }
 0x263   : > { %v986_v16 = vsel %vm893_vm9, %v2783_v31, %v982_v15  ;;  %v1007_v52 = vsel %vm1003_vm4, %v2788_v36, %v1002_v18 }
 0x264   : > { %v3387_v37 = vpop.permute.xlu1 %2790  ;;  %v2811_v38 = vpop.permute.xlu0 %2810  ;;  %v1130_v55 = vrot.slane %v986_v16, 6  ;;  %v1141_v3 = vrot.slane %v1007_v52, 5 }
 0x265   : > { %v2813_v40 = vunpack.i.h.bf16 %v2811_v38  ;;  %v2812_v44 = vunpack.i.l.bf16 %v2811_v38  ;;  %v2793_v48 = vunpack.i.h.bf16 %v3387_v37  ;;  %v2792_v4 = vunpack.i.l.bf16 %v3387_v37 }
 0x266   : > { %v1201_v15 = vsel %vm1197_vm14, %v1195_v61, %v1130_v55 }
 0x267   : > { %v965_v56 = vsel %vm962_vm10, %v2813_v40, %v2778_v26  ;;  %v963_v63 = vsel %vm962_vm10, %v2777_v49, %v2812_v44  ;;  %v1027_v6 = vsel %vm1023_vm0, %v2793_v48, %v1022_v20  ;;  %v964_v7 = vsel %vm962_vm10, %v2812_v44, %v2813_v40 }
 0x268   : > { %v3403_v53 = vpop.permute.xlu1 %2795  ;;  %v2816_v54 = vpop.permute.xlu0 %2815  ;;  %v1118_v9 = vrot.slane %v965_v56, 7  ;;  %v1116_v18 = vrot.slane %v963_v63, 7  ;;  %v1152_v22 = vrot.slane %v1027_v6, 4  ;;  %v1117_v24 = vrot.slane %v964_v7, 7 }
 0x269   : > { %v2798_v58 = vunpack.i.h.bf16 %v3403_v53  ;;  %v2818_v59 = vunpack.i.h.bf16 %v2816_v54  ;;  %v2817_v0 = vunpack.i.l.bf16 %v2816_v54  ;;  %v2797_v33 = vunpack.i.l.bf16 %v3403_v53 }
 0x26a   : > { %v1194_v32 = vsel %vm530_vm2, %v3342_v1, %v1118_v9  ;;  %v1192_v41 = vsel %vm530_vm2, %v3281_v25, %v1116_v18  ;;  %v1193_v1 = vsel %vm530_vm2, %v3347_v2, %v1117_v24  ;;  %vm1227_vm10 = vcmask 1046528  }
 0x26b   : > { %v1047_v57 = vsel %vm891_vm8, %v2798_v58, %v1043_v23  ;;  %v985_v11 = vsel %vm893_vm9, %v2818_v59, %v2783_v31  ;;  %v983_v12 = vsel %vm893_vm9, %v2782_v51, %v2817_v0  ;;  %v984_v20 = vsel %vm893_vm9, %v2817_v0, %v2818_v59 }
 0x26c   : > { %v3421_v13 = vpop.permute.xlu1 %2800  ;;  %v2821_v14 = vpop.permute.xlu0 %2820  ;;  %v1163_v23 = vrot.slane %v1047_v57, 3  ;;  %v1129_v27 = vrot.slane %v985_v11, 6  ;;  %v1127_v28 = vrot.slane %v983_v12, 6  ;;  %v1207_v31 = vsel %vm1203_vm15, %v1201_v15, %v1141_v3 }
 0x26d   : > { %v2803_v21 = vunpack.i.h.bf16 %v3421_v13  ;;  %v2823_v60 = vunpack.i.h.bf16 %v2821_v14  ;;  %v2822_v26 = vunpack.i.l.bf16 %v2821_v14  ;;  %v1128_v34 = vrot.slane %v984_v20, 6 }
 0x26e   : > { %v2802_v51 = vunpack.i.l.bf16 %v3421_v13  ;;  %v1213_v52 = vsel %vm1209_vm1, %v1207_v31, %v1152_v22  ;;  %v1198_v54 = vsel %vm1197_vm14, %v1192_v41, %v1127_v28  ;;  %v1200_v25 = vsel %vm1197_vm14, %v1194_v32, %v1129_v27 }
 0x26f   : > { %v1068_v30 = vsel %vm1064_vm13, %v2803_v21, %v3374_v17  ;;  %v1004_v42 = vsel %vm1003_vm4, %v2787_v62, %v2822_v26  ;;  %v1005_v16 = vsel %vm1003_vm4, %v2822_v26, %v2823_v60  ;;  %v1006_v44 = vsel %vm1003_vm4, %v2823_v60, %v2788_v36 }
 0x270   : > { %v3434_v38 = vpop.permute.xlu1 %2805  ;;  %v3436_v40 = vpop.permute.xlu0 %2830  ;;  %v1174_v49 = vrot.slane %v1068_v30, 2  ;;  %v1219_v56 = vsel %vm1215_vm11, %v1213_v52, %v1163_v23  ;;  %v1199_v29 = vsel %vm1197_vm14, %v1193_v1, %v1128_v34  ;;  %v1138_v59 = vrot.slane %v1004_v42, 5 }
 0x271   : > { %v2808_v55 = vunpack.i.h.bf16 %v3434_v38  ;;  %v1139_v36 = vrot.slane %v1005_v16, 5  ;;  %v1140_v61 = vrot.slane %v1006_v44, 5  ;;  %vm1093_vm9 = vcmask 515072  }
 0x272   : > { %v2807_v7 = vunpack.i.l.bf16 %v3434_v38  ;;  %v2833_v9 = vunpack.i.h.bf16 %v3436_v40  ;;  %v2832_v57 = vunpack.i.l.bf16 %v3436_v40  ;;  %v3458_v11 = vsel %vm1221_vm12, %v1219_v56, %v1174_v49  ;;  %v260_v40 = vld [vmem:[%s3930_s3] sm:$0x3] }
 0x273   : > { %v3462_v12 = vsel %vm1084_vm5, %v2808_v55, %v3376_v19  ;;  %v1204_v20 = vsel %vm1203_vm15, %v1198_v54, %v1138_v59  ;;  %v1205_v37 = vsel %vm1203_vm15, %v1199_v29, %v1139_v36  ;;  %vm1113_vm4 = vcmask 506880  }
 0x274   : > { %v2826_v62 = vpop.permute.xlu1 %2825  ;;  %v2836_v2 = vpop.permute.xlu0 %2835  ;;  %v1185_v31 = vrot.slane %v3462_v12, 1 }
 0x275   : > { %v2828_v63 = vunpack.i.h.bf16 %v2826_v62  ;;  %v2827_v0 = vunpack.i.l.bf16 %v2826_v62  ;;  %v2838_v3 = vunpack.i.h.bf16 %v2836_v2  ;;  %v2837_v6 = vunpack.i.l.bf16 %v2836_v2 }
 0x277   : > { %v1024_v14 = vsel %vm1023_vm0, %v2792_v4, %v2827_v0  ;;  %v1025_v15 = vsel %vm1023_vm0, %v2827_v0, %v2828_v63  ;;  %v1026_v18 = vsel %vm1023_vm0, %v2828_v63, %v2793_v48  ;;  %v1046_v27 = vsel %vm891_vm8, %v2838_v3, %v2798_v58 }
 0x278   : > { %v1149_v22 = vrot.slane %v1024_v14, 4  ;;  %v1150_v24 = vrot.slane %v1025_v15, 4  ;;  %v1151_v60 = vrot.slane %v1026_v18, 4  ;;  %v1071_v26 = vpop.permute.xlu1 %1070  ;;  %v2841_v23 = vpop.permute.xlu0 %2840  ;;  %v1044_v28 = vsel %vm891_vm8, %v2797_v33, %v2837_v6 }
 0x279   : > { %v1045_v4 = vsel %vm891_vm8, %v2837_v6, %v2838_v3  ;;  %v2843_v30 = vunpack.i.h.bf16 %v2841_v23  ;;  %v1206_v48 = vsel %vm1203_vm15, %v1200_v25, %v1140_v61  ;;  %v1073_v32 = vsel %vm943_vm3, %v3374_v17, %v1071_v26 }
 0x27a   : > { %v1160_v34 = vrot.slane %v1044_v28, 3  ;;  %v1161_v38 = vrot.slane %v1045_v4, 3  ;;  %v2842_v58 = vunpack.i.l.bf16 %v2841_v23  ;;  %v1210_v33 = vsel %vm1209_vm1, %v1204_v20, %v1149_v22 }
 0x27b   : > { %v1067_v53 = vsel %vm1064_vm13, %v2843_v30, %v2803_v21  ;;  %v1212_v41 = vsel %vm1209_vm1, %v1206_v48, %v1151_v60  ;;  %v1162_v42 = vrot.slane %v1046_v27, 3  ;;  %v1211_v1 = vsel %vm1209_vm1, %v1205_v37, %v1150_v24 }
 0x27c   : > { %v1091_v16 = vpop.permute.xlu1 %1090  ;;  %v2846_v44 = vpop.permute.xlu0 %2845  ;;  %v1175_v49 = vrot.slane %v1073_v32, 2  ;;  %v1065_v17 = vsel %vm1064_vm13, %v2802_v51, %v2842_v58  ;;  %v1066_v52 = vsel %vm1064_vm13, %v2842_v58, %v2843_v30  ;;  %v1173_v13 = vrot.slane %v1067_v53, 2 }
 0x27d   : > { %v2848_v54 = vunpack.i.h.bf16 %v2846_v44  ;;  %v1171_v25 = vrot.slane %v1065_v17, 2  ;;  %v1172_v21 = vrot.slane %v1066_v52, 2  ;;  %v2847_v56 = vunpack.i.l.bf16 %v2846_v44 }
 0x27e   : > { %v1094_v29 = vsel %vm1093_vm9, %v3376_v19, %v1091_v16  ;;  %v1217_v36 = vsel %vm1215_vm11, %v1211_v1, %v1161_v38  ;;  %v1216_v61 = vsel %vm1215_vm11, %v1210_v33, %v1160_v34  ;;  %v1218_v0 = vsel %vm1215_vm11, %v1212_v41, %v1162_v42 }
 0x27f   : > { %v1087_v59 = vsel %vm1084_vm5, %v2848_v54, %v2808_v55  ;;  %v1085_v2 = vsel %vm1084_vm5, %v2807_v7, %v2847_v56  ;;  %v1086_v51 = vsel %vm1084_vm5, %v2847_v56, %v2848_v54  ;;  %v1186_v15 = vrot.slane %v1094_v29, 1 }
 0x280   : > { %v1184_v62 = vrot.slane %v1087_v59, 1  ;;  %v2851_v63 = vpop.permute.xlu0 %2850  ;;  %v1182_v3 = vrot.slane %v1085_v2, 1  ;;  %v1183_v6 = vrot.slane %v1086_v51, 1  ;;  %v1223_v19 = vsel %vm1221_vm12, %v1217_v36, %v1172_v21  ;;  %v1111_v37 = vpop.permute.xlu1 %1110 }
 0x281   : > { %v2853_v12 = vunpack.i.h.bf16 %v2851_v63  ;;  %v2852_v14 = vunpack.i.l.bf16 %v2851_v63  ;;  %v1222_v55 = vsel %vm1221_vm12, %v1216_v61, %v1171_v25  ;;  %v1224_v18 = vsel %vm1221_vm12, %v1218_v0, %v1173_v13 }
 0x282   : > { %v1229_v7 = vsel %vm1227_vm10, %v1223_v19, %v1183_v6  ;;  %vm3003_vm8 = vmmov 1   ;;  %v1228_v60 = vsel %vm1227_vm10, %v1222_v55, %v1182_v3  ;;  %v1230_v4 = vsel %vm1227_vm10, %v1224_v18, %v1184_v62 }
 0x283   : > { %v1106_v20 = vsel %vm889_vm7, %v2852_v14, %v2853_v12  ;;  %vm3502_vm5 = vmpackc.low %vm530_vm2, %vm3003_vm8  ;;  %v1105_v24 = vsel %vm889_vm7, %v2832_v57, %v2852_v14  ;;  %v1107_v28 = vsel %vm889_vm7, %v2853_v12, %v2833_v9  ;;  %v1214_v30 = vsel %vm1209_vm1, %v3395_v45, %v1153_v46 }
 0x284   : > { %v1104_v26 = vpop.permute.xlu0 %1103  ;;  %v2636_v23 = vpack.c.bf16 %v1106_v20, %v1229_v7  ;;  %v2639_v27 = vpack.c.bf16 %v1105_v24, %v1228_v60  ;;  %v1231_v48 = vsel %vm1227_vm10, %v3458_v11, %v1185_v31  ;;  %v1220_v32 = vsel %vm1215_vm11, %v1214_v30, %v1164_v50 }
 0x285   : > { %v1108_v57 = vsel %vm889_vm7, %v2833_v9, %v1104_v26  ;;  %v1114_v34 = vsel %vm1113_vm4, %v1104_v26, %v1111_v37  ;;  %v1226_v45 = vsel %vm1221_vm12, %v1220_v32, %v1175_v49  ;;  %v2645_v46 = vpack.c.bf16 %v1107_v28, %v1230_v4 }
 0x286   : > { %2638 = vmatprep.subr.msk.bf16.mxu0 %vm3502_vm5, %v2636_v23  ;;  %v2642_v35 = vpack.c.bf16 %v1108_v57, %v1231_v48  ;;  %vm1238_vm7 = vcmask 72704   ;;  %v1232_v39 = vsel %vm1227_vm10, %v1226_v45, %v1186_v15  ;;  %v3004_v50 = vmov 0.0|0.0  }
 0x287   : > { %2641 = vmatpush1.bf16.msk.msra.mxu0 %vm3502_vm5, %v2639_v27  ;;  %v2649_v9 = vpack.c.bf16 %v1114_v34, %v1232_v39  ;;  %vm3005_vm12 = vmmov 0   ;;  %vm1541_vm15 = vcmask 48128   ;;  %vm1489_vm0 = vcmask 15360  }
 0x288   : > { %2644 = vmatprep.subr.msk.bf16.mxu1 %vm3502_vm5, %v2642_v35  ;;  %2648 = vmatprep.subr.bf16.mxu0 %v3004_v50  ;;  %vm1515_vm13 = vcmask 31744   ;;  %vm1567_vm1 = vcmask 64512   ;;  %vm2064_vm11 = vcmask 1041409   ;;  %vm2066_vm9 = vcmask 1043459  }
 0x289   : > { %2647 = vmatpush1.bf16.msk.msra.mxu1 %vm3502_vm5, %v2645_v46  ;;  %vm2068_vm4 = vcmask 1045509   ;;  %vm2070_vm8 = vcmask 1047559  }
 0x28a   : > { %2611 = vmatmul.mubr.msk.f32.vlgmr.msra.gmra.mrb[0].mxu0 %vm1238_vm7, %v260_v40 }
 0x28b   : > { %2651 = vmatpush3.bf16.msk.msra.mxu0 %vm3502_vm5, %v2649_v9  ;;  %2633 = vmatprep.mubr.msk.f32.mxu0 %vm3005_vm12, %v2958_v5  ;;  %vm3954_vm5 = vcmask 392192   ;;  %vm2424_vm12 = vcmask 785408  }
 0x28c   : > { %2614 = vmatmul.mubr.msk.f32.vlgmr.msra.gmra.mrb[0].mxu1 %vm1238_vm7, %v260_v40 }
 0x28e   : > { %2634 = vmatmul.mubr.msk.f32.vlgmr.msra.gmra.mrb[2].mxu0 %vm1238_vm7, %v260_v40  ;;  %vm3955_vm7 = vcmask 654336  }
 0x295   : > { %v1236_v31 = vpop.permute.xlu0 %1235 }
 0x35d   : > { %v1319_v11 = vpop.f32.mrb[0].mxu0 }
 0x35e   : > { %v1321_v38 = vpop.f32.mrb[1].mxu0  ;;  %v3543_v16 = vadd.f32 %v1319_v11, %v1236_v31 }
 0x35f   : > { %v1390_v53 = vpop.f32.mrb[0].mxu1  ;;  %v1322_v1 = vadd.f32 %v1321_v38, %v1236_v31 }
 0x360   : > { %v1391_v58 = vadd.f32 %v1390_v53, %v1236_v31  ;;  %v1392_v33 = vpop.f32.mrb[1].mxu1 }
 0x361   : > { %v1461_v41 = vpop.f32.mrb[2].mxu0  ;;  %v1393_v44 = vadd.f32 %v1392_v33, %v1236_v31 }
 0x362   : > { %1537 = vrot.lane.b32.xlu0 %v1391_v58, %s3006_s14  ;;  %1513 = vrot.lane.b32.xlu1 %v1391_v58, %s3007_s13  ;;  %v2635_v42 = vpop.f32.mrb[3].mxu0  ;;  %v1462_v49 = vadd.f32 %v1461_v41, %v1236_v31 }
 0x366   : > { %1518 = vrot.lane.b32.xlu0 %v1391_v58, %s3008_s12  ;;  %1521 = vrot.lane.b32.xlu1 %v1391_v58, %s2953_s20  ;;  %s3015_s12 = smov 74  }
 0x36a   : > { %1524 = vrot.lane.b32.xlu0 %v1391_v58, %s3009_s16  ;;  %1527 = vrot.lane.b32.xlu1 %v1391_v58, %s3010_s15  ;;  %s3018_s16 = smov 116   ;;  %s3019_s15 = smov 20  }
 0x36e   : > { %1530 = vrot.lane.b32.xlu0 %v1391_v58, %s3011_s22  ;;  %1533 = vrot.lane.b32.xlu1 %v1391_v58, %s3012_s23  ;;  %s3016_s22 = smov 38   ;;  %s3017_s23 = smov 56  }
 0x372   : > { %1563 = vrot.lane.b32.xlu0 %v1393_v44, %s3013_s24  ;;  %1485 = vrot.lane.b32.xlu1 %v3543_v16, %s3014_s21 }
 0x376   : > { %1466 = vrot.lane.b32.xlu0 %v3543_v16, %s2996_s30  ;;  %1539 = vrot.lane.b32.xlu1 %v1393_v44, %s3006_s14  ;;  %s3020_s30 = smov 44   ;;  %s3022_s14 = smov 76  }
 0x37a   : > { %1472 = vrot.lane.b32.xlu0 %v3543_v16, %s3015_s12  ;;  %1469 = vrot.lane.b32.xlu1 %v3543_v16, %s2997_s7  ;;  %s3021_s7 = smov 26   ;;  %s3023_s12 = smov 94  }
 0x37e   : > { %1478 = vrot.lane.b32.xlu0 %v3543_v16, %s3016_s22  ;;  %1475 = vrot.lane.b32.xlu1 %v3543_v16, %s3017_s23  ;;  %s3024_s22 = smov 40   ;;  %s3025_s23 = smov 58  }
 0x382   : > { %1544 = vrot.lane.b32.xlu0 %v1393_v44, %s3018_s16  ;;  %1481 = vrot.lane.b32.xlu1 %v3543_v16, %s3019_s15  ;;  %s3952_s16 = smov 48   ;;  %s2625_s15 = sshll.u32 %s3093_s1, 6 }
 0x386   : > { %1550 = vrot.lane.b32.xlu0 %v1393_v44, %s2952_s19  ;;  %1547 = vrot.lane.b32.xlu1 %v1393_v44, %s2994_s17  ;;  %s3026_s17 = smov 118  }
 0x38a   : > { %1556 = vrot.lane.b32.xlu0 %v1393_v44, %s3020_s30  ;;  %1553 = vrot.lane.b32.xlu1 %v1393_v44, %s3001_s2  ;;  %s3027_s2 = smov 22  }
 0x38e   : > { %1511 = vrot.lane.b32.xlu0 %v1322_v1, %s3007_s13  ;;  %1559 = vrot.lane.b32.xlu1 %v1393_v44, %s3021_s7  ;;  %s3028_s13 = smov 100  }
 0x392   : > { %1492 = vrot.lane.b32.xlu0 %v1322_v1, %s2951_s18  ;;  %1487 = vrot.lane.b32.xlu1 %v1322_v1, %s3014_s21  ;;  %s3949_s21 = smov 64  }
 0x396   : > { %1498 = vrot.lane.b32.xlu0 %v1322_v1, %s3022_s14  ;;  %1495 = vrot.lane.b32.xlu1 %v1322_v1, %s3023_s12  ;;  %s3856_s14 = scalar_lea.hbm %s3932_s5, %s2625_s15 }
 0x39a   : > { %1504 = vrot.lane.b32.xlu0 %v1322_v1, %s3024_s22  ;;  %1501 = vrot.lane.b32.xlu1 %v1322_v1, %s3025_s23 }
 0x39e   : > { %1570 = vrot.lane.b32.xlu0 %v1462_v49, %s3026_s17  ;;  %1507 = vrot.lane.b32.xlu1 %v1322_v1, %s3027_s2  ;;  %s3029_s17 = smov [#allocation4]  }
 0x39f   : > { %s2859_s2 = sshll.u32 %s3029_s17, 4  ;;  %s2860_s2 = int_to_ptr.vmem [resolvable:$false] %s2859_s2 }
 0x3a2   : > { %1576 = vrot.lane.b32.xlu0 %v1462_v49, %s2991_s11  ;;  %1565 = vrot.lane.b32.xlu1 %v1462_v49, %s3013_s24  ;;  %s3950_s24 = smov 16   ;;  %s3951_s11 = smov 32  }
 0x3a6   : > { %1573 = vrot.lane.b32.xlu1 %v1462_v49, %s3028_s13  ;;  %s2861_s13 = scalar_lea.vmem %s2860_s2, 128 }
 0x3d4   : > { %v1538_v17 = vpop.permute.xlu0 %1537  ;;  %v1514_v52 = vpop.permute.xlu1 %1513 }
 0x3d8   : > { %v3562_v54 = vpop.permute.xlu0 %1518  ;;  %v1522_v13 = vpop.permute.xlu1 %1521 }
 0x3dc   : > { %v1525_v25 = vpop.permute.xlu0 %1524  ;;  %v1528_v21 = vpop.permute.xlu1 %1527 }
 0x3dd   : > { %v1679_v48 = vcombine.low %v1522_v13, %v1528_v21 }
 0x3df   : > { %v1686_v11 = vrot.slane %v1679_v48, %v3166_v43 }
 0x3e0   : > { %v1531_v56 = vpop.permute.xlu0 %1530  ;;  %v1534_v29 = vpop.permute.xlu1 %1533 }
 0x3e1   : > { %v1687_v23 = vcombine.low %v1525_v25, %v1531_v56 }
 0x3e3   : > { %v1694_v35 = vrot.slane %v1687_v23, %v3166_v43 }
 0x3e4   : > { %v3564_v59 = vpop.permute.xlu0 %1563  ;;  %v1486_v36 = vpop.permute.xlu1 %1485 }
 0x3e5   : > { %v1711_v41 = vcombine.low %v1686_v11, %v1694_v35 }
 0x3e7   : > { %v1718_v21 = vrot.slane %v1711_v41, %v3171_v47 }
 0x3e8   : > { %v1467_v61 = vpop.permute.xlu0 %1466  ;;  %v1540_v62 = vpop.permute.xlu1 %1539 }
 0x3e9   : > { %v1542_v20 = vsel %vm1541_vm15, %v1538_v17, %v1540_v62  ;;  %vm2426_vm15 = vcmask 916480  }
 0x3ec   : > { %v1473_v2 = vpop.permute.xlu0 %1472  ;;  %v1470_v51 = vpop.permute.xlu1 %1469 }
 0x3ed   : > { %v1587_v28 = vcombine.low %v1467_v61, %v1473_v2  ;;  %v1579_v4 = vcombine.low %v3543_v16, %v1470_v51 }
 0x3ef   : > { %v1594_v46 = vrot.slane %v1587_v28, %v3166_v43  ;;  %v1586_v40 = vrot.slane %v1579_v4, %v3166_v43 }
 0x3f0   : > { %v1479_v63 = vpop.permute.xlu0 %1478  ;;  %v1476_v0 = vpop.permute.xlu1 %1475 }
 0x3f1   : > { %v1611_v44 = vcombine.low %v1586_v40, %v1594_v46 }
 0x3f4   : > { %v1545_v3 = vpop.permute.xlu0 %1544  ;;  %v1482_v6 = vpop.permute.xlu1 %1481 }
 0x3f5   : > { %v1695_v27 = vcombine.low %v1534_v29, %v1545_v3  ;;  %v1595_v30 = vcombine.low %v1476_v0, %v1482_v6 }
 0x3f7   : > { %v1702_v45 = vrot.slane %v1695_v27, %v3166_v43  ;;  %v1602_v39 = vrot.slane %v1595_v30, %v3166_v43 }
 0x3f8   : > { %v3566_v12 = vpop.permute.xlu0 %1550  ;;  %v1548_v14 = vpop.permute.xlu1 %1547 }
 0x3f9   : > { %v1703_v24 = vcombine.low %v1542_v20, %v1548_v14 }
 0x3fb   : > { %v1710_v32 = vrot.slane %v1703_v24, %v3166_v43 }
 0x3fc   : > { %v3568_v15 = vpop.permute.xlu0 %1556  ;;  %v3570_v19 = vpop.permute.xlu1 %1553 }
 0x3fd   : > { %v1719_v31 = vcombine.low %v1702_v45, %v1710_v32 }
 0x3ff   : > { %v1726_v49 = vrot.slane %v1719_v31, %v3171_v47 }
 0x400   : > { %v1512_v55 = vpop.permute.xlu0 %1511  ;;  %v3572_v18 = vpop.permute.xlu1 %1559 }
 0x401   : > { %v1516_v33 = vsel %vm1515_vm13, %v1512_v55, %v1514_v52  ;;  %v3592_v62 = vcombine.low %v1718_v21, %v1726_v49  ;;  %v3594_v51 = vcombine.high %v1718_v21, %v1726_v49  ;;  %v1729_v55 = vcombine.low %v3566_v12, %v3568_v15  ;;  %vm3957_vm13 = vmmov %vm3954_vm5 }
 0x403   : > { %v1736_v30 = vrot.slane %v1729_v55, %v3166_v43 }
 0x404   : > { %v1493_v7 = vpop.permute.xlu0 %1492  ;;  %v1488_v22 = vpop.permute.xlu1 %1487 }
 0x405   : > { %v1490_v60 = vsel %vm1489_vm0, %v1486_v36, %v1488_v22  ;;  %v1618_v36 = vrot.slane %v1611_v44, %v3171_v47 }
 0x406   : > { %v1603_v26 = vcombine.low %v1479_v63, %v1490_v60  ;;  %v1797_v60 = vrot.slane %v3594_v51, 1 }
 0x408   : > { %v1499_v37 = vpop.permute.xlu0 %1498  ;;  %v1496_v57 = vpop.permute.xlu1 %1495  ;;  %v1610_v34 = vrot.slane %v1603_v26, %v3166_v43 }
 0x409   : > { %v1629_v38 = vcombine.low %v1493_v7, %v1499_v37  ;;  %v1790_v7 = vrot.slane %v3592_v62, 1 }
 0x40a   : > { %v1619_v58 = vcombine.low %v1602_v39, %v1610_v34 }
 0x40b   : > { %v1636_v17 = vrot.slane %v1629_v38, %v3166_v43 }
 0x40c   : > { %v1505_v50 = vpop.permute.xlu0 %1504  ;;  %v1502_v9 = vpop.permute.xlu1 %1501  ;;  %v1626_v25 = vrot.slane %v1619_v58, %v3171_v47 }
 0x40d   : > { %v1637_v53 = vcombine.low %v1496_v57, %v1502_v9  ;;  %v1645_v42 = vcombine.low %v1505_v50, %v1516_v33 }
 0x40e   : > { %v1627_v63 = vcombine.low %v1618_v36, %v1626_v25  ;;  %v1628_v3 = vcombine.high %v1618_v36, %v1626_v25 }
 0x40f   : > { %v1644_v16 = vrot.slane %v1637_v53, %v3166_v43  ;;  %v1652_v56 = vrot.slane %v1645_v42, %v3166_v43 }
 0x410   : > { %v1508_v1 = vpop.permute.xlu1 %1507  ;;  %v1571_v0 = vpop.permute.xlu0 %1570  ;;  %v1794_v23 = vrot.slane %v1628_v3, 1 }
 0x411   : > { %v1653_v13 = vcombine.low %v1508_v1, %v3562_v54  ;;  %v1661_v29 = vcombine.low %v1636_v17, %v1644_v16  ;;  %v1737_v54 = vcombine.low %v3570_v19, %v3572_v18  ;;  %v1787_v18 = vrot.slane %v1627_v63, 1 }
 0x413   : > { %v1660_v52 = vrot.slane %v1653_v13, %v3166_v43  ;;  %v1668_v6 = vrot.slane %v1661_v29, %v3171_v47  ;;  %v1744_v19 = vrot.slane %v1737_v54, %v3166_v43 }
 0x414   : > { %v1566_v61 = vpop.permute.xlu1 %1565  ;;  %v1577_v37 = vpop.permute.xlu0 %1576 }
 0x415   : > { %v1669_v2 = vcombine.low %v1652_v56, %v1660_v52  ;;  %v1568_v26 = vsel %vm1567_vm1, %v3564_v59, %v1566_v61  ;;  %v1761_v45 = vcombine.low %v1736_v30, %v1744_v19  ;;  %v1753_v46 = vcombine.low %v1571_v0, %v1577_v37  ;;  %vm3958_vm1 = vmmov %vm3955_vm7 }
 0x417   : > { %v1676_v14 = vrot.slane %v1669_v2, %v3171_v47  ;;  %v1760_v17 = vrot.slane %v1753_v46, %v3166_v43  ;;  %v1768_v21 = vrot.slane %v1761_v45, %v3171_v47 }
 0x418   : > { %v1574_v20 = vpop.permute.xlu1 %1573 }
 0x419   : > { %v1677_v22 = vcombine.low %v1668_v6, %v1676_v14  ;;  %v1678_v24 = vcombine.high %v1668_v6, %v1676_v14  ;;  %v1745_v4 = vcombine.low %v1568_v26, %v1574_v20 }
 0x41b   : > { %v1788_v27 = vrot.slane %v1677_v22, 1  ;;  %v1795_v28 = vrot.slane %v1678_v24, 1  ;;  %v1752_v40 = vrot.slane %v1745_v4, %v3166_v43 }
 0x41d   : > { %v1789_v12 = vsel %vm1227_vm10, %v1787_v18, %v1788_v27  ;;  %v1791_v15 = vsel %vm1227_vm10, %v1788_v27, %v1790_v7  ;;  %v1796_v57 = vsel %vm1227_vm10, %v1794_v23, %v1795_v28  ;;  %v1798_v48 = vsel %vm1227_vm10, %v1795_v28, %v1797_v60 }
 0x41e   : > { %v1809_v59 = vmax.f32 %v1627_v63, %v1789_v12  ;;  %v1810_v32 = vmax.f32 %v1677_v22, %v1791_v15  ;;  %v1813_v34 = vmax.f32 %v1628_v3, %v1796_v57  ;;  %v1814_v35 = vmax.f32 %v1678_v24, %v1798_v48 }
 0x41f   : > { %v1769_v52 = vcombine.low %v1752_v40, %v1760_v17 }
 0x420   : > { %v1827_v39 = vcombine.high %v1809_v59, %v1809_v59  ;;  %v1834_v50 = vrot.slane %v1809_v59, %v3166_v43  ;;  %v1844_v9 = vcombine.high %v1810_v32, %v1810_v32  ;;  %v1851_v11 = vrot.slane %v1810_v32, %v3166_v43 }
 0x421   : > { %v1895_v31 = vcombine.high %v1813_v34, %v1813_v34  ;;  %v1902_v38 = vrot.slane %v1813_v34, %v3166_v43  ;;  %v1912_v53 = vcombine.high %v1814_v35, %v1814_v35  ;;  %v1919_v58 = vrot.slane %v1814_v35, %v3166_v43 }
 0x422   : > { %v3621_v33 = vrot.slane %v1827_v39, %v3166_v43  ;;  %v1842_v41 = vcombine.high %v1834_v50, %v1834_v50  ;;  %v3624_v42 = vrot.slane %v1844_v9, %v3166_v43  ;;  %v1859_v16 = vcombine.high %v1851_v11, %v1851_v11 }
 0x423   : > { %v1910_v44 = vcombine.high %v1902_v38, %v1902_v38  ;;  %v3627_v1 = vrot.slane %v1912_v53, %v3166_v43  ;;  %v1927_v49 = vcombine.high %v1919_v58, %v1919_v58  ;;  %v3636_v36 = vrot.slane %v1895_v31, %v3166_v43 }
 0x424   : > { %v1860_v13 = vcombine.high %v3624_v42, %v3624_v42  ;;  %v1996_v25 = vmax.f32 %v1842_v41, 0.0  ;;  %v2000_v29 = vmax.f32 %v1859_v16, 0.0  ;;  %v1995_v61 = vmax.f32 %v1834_v50, 0.0 }
 0x425   : > { %v1928_v56 = vcombine.high %v3627_v1, %v3627_v1  ;;  %v1997_v2 = vmax.f32 %v3621_v33, 0.0  ;;  %v2012_v54 = vmax.f32 %v1910_v44, 0.0  ;;  %v1999_v63 = vmax.f32 %v1851_v11, 0.0 }
 0x426   : > { %v2002_v0 = vmax.f32 %v1860_v13, 0.0  ;;  %v2011_v3 = vmax.f32 %v1902_v38, 0.0  ;;  %v2016_v6 = vmax.f32 %v1927_v49, 0.0  ;;  %v2063_v55 = vrot.slane %v1996_v25, 7 }
 0x427   : > { %v2018_v14 = vmax.f32 %v1928_v56, 0.0  ;;  %v2081_v20 = vrot.slane %v2000_v29, 7  ;;  %v2123_v22 = vrot.slane %v2012_v54, 7  ;;  %v2001_v24 = vmax.f32 %v3624_v42, 0.0 }
 0x428   : > { %v2015_v19 = vmax.f32 %v1919_v58, 0.0  ;;  %v2137_v18 = vrot.slane %v2016_v6, 7  ;;  %v1776_v26 = vrot.slane %v1769_v52, %v3171_v47  ;;  %v2013_v23 = vmax.f32 %v3636_v36, 0.0 }
 0x429   : > { %v2082_v27 = vsel %vm2064_vm11, %v2081_v20, %v1999_v63  ;;  %v2065_v28 = vsel %vm2064_vm11, %v2063_v55, %v1995_v61  ;;  %v2124_v4 = vsel %vm2064_vm11, %v2123_v22, %v2011_v3  ;;  %v2017_v57 = vmax.f32 %v3627_v1, 0.0 }
 0x42a   : > { %v2138_v30 = vsel %vm2064_vm11, %v2137_v18, %v2015_v19  ;;  %v1777_v37 = vcombine.low %v1768_v21, %v1776_v26  ;;  %v1778_v12 = vcombine.high %v1768_v21, %v1776_v26  ;;  %v2083_v15 = vsel %vm2066_vm9, %v2081_v20, %v2082_v27 }
 0x42b   : > { %v3648_v48 = vrot.slane %v2002_v0, 7  ;;  %v3650_v59 = vrot.slane %v2018_v14, 7  ;;  %v2139_v32 = vsel %vm2066_vm9, %v2137_v18, %v2138_v30  ;;  %v2084_v45 = vsel %vm2068_vm4, %v2081_v20, %v2083_v15 }
 0x42c   : > { %v1792_v34 = vrot.slane %v1777_v37, 1  ;;  %v1799_v35 = vrot.slane %v1778_v12, 1  ;;  %v2140_v46 = vsel %vm2068_vm4, %v2137_v18, %v2139_v32  ;;  %v2067_v40 = vsel %vm2066_vm9, %v2063_v55, %v2065_v28 }
 0x42d   : > { %v2125_v39 = vsel %vm2066_vm9, %v2123_v22, %v2124_v4  ;;  %v1843_v50 = vcombine.high %v3621_v33, %v3621_v33  ;;  %v1911_v9 = vcombine.high %v3636_v36, %v3636_v36  ;;  %v2085_v16 = vsel %vm2070_vm8, %v2081_v20, %v2084_v45 }
 0x42e   : > { %v1793_v11 = vsel %vm1227_vm10, %v1790_v7, %v1792_v34  ;;  %v1800_v31 = vsel %vm1227_vm10, %v1797_v60, %v1799_v35  ;;  %v1812_v38 = vmax.f32 %v1777_v37, %v1792_v34  ;;  %v1816_v53 = vmax.f32 %v1778_v12, %v1799_v35 }
 0x42f   : > { %v1811_v58 = vmax.f32 %v3592_v62, %v1793_v11  ;;  %v1815_v41 = vmax.f32 %v3594_v51, %v1800_v31  ;;  %v2141_v44 = vsel %vm2070_vm8, %v2137_v18, %v2140_v46  ;;  %v2069_v7 = vsel %vm2068_vm4, %v2063_v55, %v2067_v40 }
 0x430   : > { %v1817_v49 = vsel %vm1227_vm10, %v1812_v38, 0.0  ;;  %v1818_v17 = vsel %vm1227_vm10, %v1816_v53, 0.0  ;;  %v2126_v13 = vsel %vm2068_vm4, %v2123_v22, %v2125_v39  ;;  %v1998_v62 = vmax.f32 %v1843_v50, 0.0 }
 0x431   : > { %v1868_v60 = vrot.slane %v1811_v58, %v3166_v43  ;;  %v1878_v25 = vcombine.high %v1817_v49, %v1817_v49  ;;  %v1885_v21 = vrot.slane %v1817_v49, %v3166_v43  ;;  %v1861_v56 = vcombine.high %v1811_v58, %v1811_v58 }
 0x432   : > { %v3678_v51 = vrot.slane %v1815_v41, %v3166_v43  ;;  %v1946_v29 = vcombine.high %v1818_v17, %v1818_v17  ;;  %v1953_v52 = vrot.slane %v1818_v17, %v3166_v43  ;;  %v1929_v0 = vcombine.high %v1815_v41, %v1815_v41 }
 0x433   : > { %v1876_v61 = vcombine.high %v1868_v60, %v1868_v60  ;;  %v3682_v54 = vrot.slane %v1878_v25, %v3166_v43  ;;  %v1893_v63 = vcombine.high %v1885_v21, %v1885_v21  ;;  %v2211_v20 = vcombine.low %v2085_v16, %v2141_v44 }
 0x434   : > { %v1944_v3 = vcombine.high %v3678_v51, %v3678_v51  ;;  %v3687_v6 = vrot.slane %v1946_v29, %v3166_v43  ;;  %v1961_v14 = vcombine.high %v1953_v52, %v1953_v52  ;;  %v2071_v26 = vsel %vm2070_vm8, %v2063_v55, %v2069_v7 }
 0x435   : > { %v1894_v19 = vcombine.high %v3682_v54, %v3682_v54  ;;  %v2004_v18 = vmax.f32 %v1876_v61, 0.0  ;;  %v2127_v27 = vsel %vm2070_vm8, %v2123_v22, %v2126_v13  ;;  %v3694_v28 = vrot.slane %v1861_v56, %v3166_v43 }
 0x436   : > { %v1962_v4 = vcombine.high %v3687_v6, %v3687_v6  ;;  %v2008_v30 = vmax.f32 %v1893_v63, 0.0  ;;  %v2014_v37 = vmax.f32 %v1911_v9, 0.0  ;;  %v3699_v12 = vrot.slane %v1929_v0, %v3166_v43 }
 0x437   : > { %v2003_v15 = vmax.f32 %v1868_v60, 0.0  ;;  %v2007_v32 = vmax.f32 %v1885_v21, 0.0  ;;  %v2020_v34 = vmax.f32 %v1944_v3, 0.0  ;;  %v2009_v35 = vmax.f32 %v3682_v54, 0.0 }
 0x438   : > { %v2010_v45 = vmax.f32 %v1894_v19, 0.0  ;;  %v2019_v55 = vmax.f32 %v3678_v51, 0.0  ;;  %v2024_v22 = vmax.f32 %v1961_v14, 0.0  ;;  %v2023_v46 = vmax.f32 %v1953_v52, 0.0 }
 0x439   : > { %v2026_v40 = vmax.f32 %v1962_v4, 0.0  ;;  %v2095_v39 = vrot.slane %v2004_v18, 7  ;;  %v2109_v50 = vrot.slane %v2008_v30, 7  ;;  %v2151_v11 = vrot.slane %v2020_v34, 7 }
 0x43a   : > { %v2165_v31 = vrot.slane %v2024_v22, 7  ;;  %v2218_v9 = vrot.slane %v2211_v20, %v3171_v47  ;;  %v2193_v38 = vcombine.low %v2071_v26, %v2127_v27  ;;  %v2074_v53 = vrot.slane %v1998_v62, 7 }
 0x43b   : > { %v2130_v58 = vrot.slane %v2014_v37, 7  ;;  %v2110_v41 = vsel %vm2064_vm11, %v2109_v50, %v2007_v32  ;;  %v2096_v16 = vsel %vm2064_vm11, %v2095_v39, %v2003_v15  ;;  %v2152_v26 = vsel %vm2064_vm11, %v2151_v11, %v2019_v55 }
 0x43c   : > { %v2305_v44 = vrot.slane %v2218_v9, %v3166_v43  ;;  %v3708_v49 = vrot.slane %v2193_v38, %v3171_v47  ;;  %v2111_v17 = vsel %vm2066_vm9, %v2109_v50, %v2110_v41  ;;  %v2166_v7 = vsel %vm2064_vm11, %v2165_v31, %v2023_v46 }
 0x43d   : > { %v2075_v13 = vsel %vm2064_vm11, %v2074_v53, %v1997_v2  ;;  %v2131_v60 = vsel %vm2064_vm11, %v2130_v58, %v2013_v23  ;;  %v2112_v25 = vsel %vm2068_vm4, %v2109_v50, %v2111_v17  ;;  %v2167_v21 = vsel %vm2066_vm9, %v2165_v31, %v2166_v7 }
 0x43e   : > { %2306 = vrot.lane.b32.xlu1 %v2305_v44, %s3949_s21  ;;  %v2201_v62 = vcombine.high %v3708_v49, %v2958_v5  ;;  %v2076_v56 = vsel %vm2066_vm9, %v2074_v53, %v2075_v13  ;;  %v2132_v51 = vsel %vm2066_vm9, %v2130_v58, %v2131_v60  ;;  %v2113_v33 = vsel %vm2070_vm8, %v2109_v50, %v2112_v25 }
 0x43f   : > { %v3726_v2 = vrot.slane %v2010_v45, 7  ;;  %v2077_v36 = vsel %vm2068_vm4, %v2074_v53, %v2076_v56  ;;  %v2133_v23 = vsel %vm2068_vm4, %v2130_v58, %v2132_v51  ;;  %v2168_v29 = vsel %vm2068_vm4, %v2165_v31, %v2167_v21 }
 0x440   : > { %v2272_v52 = vrot.slane %v2201_v62, %v3166_v43  ;;  %v2078_v61 = vsel %vm2070_vm8, %v2074_v53, %v2077_v36  ;;  %v2134_v63 = vsel %vm2070_vm8, %v2130_v58, %v2133_v23  ;;  %v2169_v0 = vsel %vm2070_vm8, %v2165_v31, %v2168_v29 }
 0x441   : > { %v2202_v3 = vcombine.low %v2078_v61, %v2134_v63  ;;  %v2247_v14 = vcombine.low %v2113_v33, %v2169_v0  ;;  %v2219_v20 = vcombine.high %v2218_v9, %v2958_v5  ;;  %v2097_v19 = vsel %vm2066_vm9, %v2095_v39, %v2096_v16 }
 0x442   : > { %2273 = vrot.lane.b32.xlu1 %v2272_v52, %s3950_s24  ;;  %v2098_v18 = vsel %vm2068_vm4, %v2095_v39, %v2097_v19  ;;  %v2089_v27 = vsel %vm2064_vm11, %v3648_v48, %v2001_v24  ;;  %v2145_v4 = vsel %vm2064_vm11, %v3650_v59, %v2017_v57  ;;  %v2153_v32 = vsel %vm2066_vm9, %v2151_v11, %v2152_v26 }
 0x443   : > { %v2209_v30 = vrot.slane %v2202_v3, %v3171_v47  ;;  %v2254_v37 = vrot.slane %v2247_v14, %v3171_v47  ;;  %v2099_v15 = vsel %vm2070_vm8, %v2095_v39, %v2098_v18  ;;  %v2154_v34 = vsel %vm2068_vm4, %v2151_v11, %v2153_v32 }
 0x444   : > { %v2090_v42 = vsel %vm2066_vm9, %v3648_v48, %v2089_v27  ;;  %v2146_v24 = vsel %vm2066_vm9, %v3650_v59, %v2145_v4  ;;  %v1877_v1 = vcombine.high %v3694_v28, %v3694_v28  ;;  %v2155_v55 = vsel %vm2070_vm8, %v2151_v11, %v2154_v34 }
 0x445   : > { %v2283_v57 = vrot.slane %v2209_v30, %v3166_v43  ;;  %v2382_v45 = vrot.slane %v2254_v37, %v3166_v43  ;;  %v2091_v22 = vsel %vm2068_vm4, %v3648_v48, %v2090_v42  ;;  %v2229_v46 = vcombine.low %v2099_v15, %v2155_v55 }
 0x446   : > { %v2092_v39 = vsel %vm2070_vm8, %v3648_v48, %v2091_v22  ;;  %v2147_v50 = vsel %vm2068_vm4, %v3650_v59, %v2146_v24  ;;  %v1945_v31 = vcombine.high %v3699_v12, %v3699_v12  ;;  %v2172_v9 = vrot.slane %v2026_v40, 7 }
 0x447   : > { %2284 = vrot.lane.b32.xlu1 %v2283_v57, %s3951_s11  ;;  %2383 = vrot.lane.b32.xlu0 %v2382_v45, %s3949_s21  ;;  %v2148_v11 = vsel %vm2070_vm8, %v3650_v59, %v2147_v50  ;;  %v2006_v38 = vmax.f32 %v1877_v1, 0.0  ;;  %v3775_v53 = vrot.slane %v2229_v46, %v3171_v47  ;;  %v2117_v41 = vsel %vm2064_vm11, %v3726_v2, %v2009_v35 }
 0x448   : > { %v2220_v58 = vcombine.low %v2092_v39, %v2148_v11  ;;  %v2022_v48 = vmax.f32 %v1945_v31, 0.0  ;;  %v2005_v40 = vmax.f32 %v3694_v28, 0.0  ;;  %v2025_v16 = vmax.f32 %v3687_v6, 0.0 }
 0x449   : > { %v2316_v44 = vrot.slane %v2219_v20, %v3166_v43  ;;  %v2102_v17 = vrot.slane %v2006_v38, 7  ;;  %v2021_v59 = vmax.f32 %v3699_v12, 0.0  ;;  %v2237_v7 = vcombine.high %v3775_v53, %v2958_v5 }
 0x44a   : > { %v2227_v13 = vrot.slane %v2220_v58, %v3171_v47  ;;  %v2158_v60 = vrot.slane %v2022_v48, 7  ;;  %v2118_v28 = vsel %vm2066_vm9, %v3726_v2, %v2117_v41  ;;  %v2173_v6 = vsel %vm2064_vm11, %v2172_v9, %v2025_v16 }
 0x44b   : > { %2317 = vrot.lane.b32.xlu1 %v2316_v44, %s2952_s19  ;;  %v2103_v54 = vsel %vm2064_vm11, %v2102_v17, %v2005_v40  ;;  %v2349_v35 = vrot.slane %v2237_v7, %v3166_v43  ;;  %v2210_v21 = vcombine.high %v2209_v30, %v2958_v5  ;;  %v2174_v33 = vsel %vm2066_vm9, %v2172_v9, %v2173_v6 }
 0x44c   : > { %v2104_v25 = vsel %vm2066_vm9, %v2102_v17, %v2103_v54  ;;  %v2159_v12 = vsel %vm2064_vm11, %v2158_v60, %v2021_v59  ;;  %v2327_v62 = vrot.slane %v2227_v13, %v3166_v43  ;;  %v2119_v29 = vsel %vm2068_vm4, %v3726_v2, %v2118_v28 }
 0x44d   : > { %v2105_v56 = vsel %vm2068_vm4, %v2102_v17, %v2104_v25  ;;  %v2160_v51 = vsel %vm2066_vm9, %v2158_v60, %v2159_v12  ;;  %2350 = vrot.lane.b32.xlu0 %v2349_v35, %s3950_s24  ;;  %v2175_v52 = vsel %vm2068_vm4, %v2172_v9, %v2174_v33  ;;  %v2294_v0 = vrot.slane %v2210_v21, %v3166_v43 }
 0x44e   : > { %v2106_v36 = vsel %vm2070_vm8, %v2102_v17, %v2105_v56  ;;  %v2161_v23 = vsel %vm2068_vm4, %v2158_v60, %v2160_v51  ;;  %v2228_v3 = vcombine.high %v2227_v13, %v2958_v5  ;;  %v2120_v14 = vsel %vm2070_vm8, %v3726_v2, %v2119_v29 }
 0x44f   : > { %2328 = vrot.lane.b32.xlu1 %v2327_v62, %s2953_s20  ;;  %v2162_v61 = vsel %vm2070_vm8, %v2158_v60, %v2161_v23  ;;  %v2176_v20 = vsel %vm2070_vm8, %v2172_v9, %v2175_v52  ;;  %v2255_v26 = vcombine.high %v2254_v37, %v2958_v5  ;;  %vm3953_vm10 = vcmask 261120  }
 0x450   : > { %v2238_v63 = vcombine.low %v2106_v36, %v2162_v61  ;;  %v2256_v27 = vcombine.low %v2120_v14, %v2176_v20  ;;  %v2338_v4 = vrot.slane %v2228_v3, %v3166_v43  ;;  %vm3956_vm0 = vmmov %vm3953_vm10 }
 0x451   : > { %v2393_v30 = vrot.slane %v2255_v26, %v3166_v43 }
 0x452   : > { %v2245_v19 = vrot.slane %v2238_v63, %v3171_v47  ;;  %v2263_v2 = vrot.slane %v2256_v27, %v3171_v47 }
 0x453   : > { %2295 = vrot.lane.b32.xlu1 %v2294_v0, %s3952_s16 }
 0x454   : > { %v2360_v18 = vrot.slane %v2245_v19, %v3166_v43  ;;  %v2404_v15 = vrot.slane %v2263_v2, %v3166_v43  ;;  %v2246_v32 = vcombine.high %v2245_v19, %v2958_v5  ;;  %v2264_v34 = vcombine.high %v2263_v2, %v2958_v5 }
 0x456   : > { %2361 = vrot.lane.b32.xlu0 %v2360_v18, %s3951_s11  ;;  %v2371_v37 = vrot.slane %v2246_v32, %v3166_v43  ;;  %v2415_v42 = vrot.slane %v2264_v34, %v3166_v43 }
 0x457   : > { %2339 = vrot.lane.b32.xlu1 %v2338_v4, %s2951_s18 }
 0x45a   : > { %2394 = vrot.lane.b32.xlu0 %v2393_v30, %s2952_s19 }
 0x45e   : > { %2405 = vrot.lane.b32.xlu0 %v2404_v15, %s2953_s20 }
 0x462   : > { %2372 = vrot.lane.b32.xlu0 %v2371_v37, %s3952_s16 }
 0x466   : > { %2416 = vrot.lane.b32.xlu0 %v2415_v42, %s2951_s18  ;;  %s3841_s18 = sand.u32 1, %s2941_s26  }
 0x467   : > { %s2606_s19 = sshll.u32 %s3841_s18, 2  ;;  %s2479_s22 = scalar_lea.sflag [#allocation5], %s3841_s18 }
 0x468   : > { %s248_s20 = scalar_lea.vmem [#allocation4], %s2606_s19 }
 0x469   : > { %s2498_s12 = sshll.u32 %s248_s20, 4  ;;  %s2499_s12 = int_to_ptr.vmem [resolvable:$true] %s2498_s12 }
 0x46a   : > { %s2855_s23 = scalar_lea.vmem %s2499_s12, 64  ;;  %p2862_p0 = scmp.lt.s32.totalorder %s2499_s12, %s2860_s2 }
 0x46b   : > { %p2856_p11 = scmp.ne.s32.totalorder %s2499_s12, %s2855_s23  ;;  %p2863_p1 = scmp.lt.s32.totalorder %s2861_s13, %s2855_s23 }
 0x46d   : > { %p2857_p12 = pnand %p2856_p11, %p3110_p5  ;;  %p2864_p2 = por %p2863_p1, %p2862_p0 }
 0x46f   : > { %p2858_p13 = pneg %p2857_p12 }
 0x471   : > { %p2865_p3 = pnand %p2864_p2, %p2858_p13 }
 0x4b0   : > { %v2307_v24 = vpop.permute.xlu1 %2306 }
 0x4b4   : > { %v2274_v47 = vpop.permute.xlu1 %2273 }
 0x4b5   : > { %v2419_v39 = vsel %vm895_vm6, %v3708_v49, %v2274_v47 }
 0x4b9   : > { %v2285_v1 = vpop.permute.xlu1 %2284  ;;  %v2384_v57 = vpop.permute.xlu0 %2383 }
 0x4ba   : > { %v2420_v5 = vsel %vm3953_vm10, %v2419_v39, %v2285_v1 }
 0x4bd   : > { %v2318_v45 = vpop.permute.xlu1 %2317 }
 0x4bf   : > { %v2351_v22 = vpop.permute.xlu0 %2350 }
 0x4c0   : > { %v2428_v41 = vsel %vm895_vm6, %v3775_v53, %v2351_v22 }
 0x4c1   : > { %v2329_v55 = vpop.permute.xlu1 %2328 }
 0x4c5   : > { %v2296_v46 = vpop.permute.xlu1 %2295 }
 0x4c6   : > { %v2421_v31 = vsel %vm3954_vm5, %v2420_v5, %v2296_v46 }
 0x4c7   : > { %v2422_v9 = vsel %vm943_vm3, %v2421_v31, %v2307_v24 }
 0x4c8   : > { %v2362_v50 = vpop.permute.xlu0 %2361  ;;  %v2423_v11 = vsel %vm3955_vm7, %v2422_v9, %v2318_v45 }
 0x4c9   : > { %v2425_v58 = vsel %vm2424_vm12, %v2423_v11, %v2329_v55  ;;  %v2340_v48 = vpop.permute.xlu1 %2339  ;;  %v2429_v49 = vsel %vm3956_vm0, %v2428_v41, %v2362_v50 }
 0x4ca   : > { %v2427_v16 = vsel %vm2426_vm15, %v2425_v58, %v2340_v48 }
 0x4cb   : > { %v2441_v7 = vmul.f32 %v2427_v16, %v2427_v16  ;;  %v2435_v53 = vsel %vm1197_vm14, %v2427_v16, 0.0 }
 0x4cc   : > { %v2395_v43 = vpop.permute.xlu0 %2394 }
 0x4cd   : > { %v2443_v12 = vsel %vm1197_vm14, %v2441_v7, 0.0 }
 0x4d0   : > { %v2406_v38 = vpop.permute.xlu0 %2405 }
 0x4d4   : > { %v2373_v40 = vpop.permute.xlu0 %2372 }
 0x4d5   : > { %v2430_v44 = vsel %vm3957_vm13, %v2429_v49, %v2373_v40 }
 0x4d6   : > { %v2431_v17 = vsel %vm943_vm3, %v2430_v44, %v2384_v57 }
 0x4d7   : > { %v2432_v59 = vsel %vm3958_vm1, %v2431_v17, %v2395_v43 }
 0x4d8   : > { %v2433_v13 = vsel %vm2424_vm12, %v2432_v59, %v2406_v38  ;;  %v2417_v60 = vpop.permute.xlu0 %2416 }
 0x4d9   : > { %v2434_v54 = vsel %vm2426_vm15, %v2433_v13, %v2417_v60 }
 0x4da   : > { %v2436_v28 = vsel %vm1197_vm14, %v2434_v54, 0.0  ;;  %v2442_v6 = vmul.f32 %v2434_v54, %v2434_v54  ;;  %v2451_v35 = vcombine.low %v2427_v16, %v2434_v54 }
 0x4db   : > { %v2437_v25 = vadd.f32 %v2436_v28, %v2435_v53 }
 0x4dc   : > { %v2444_v21 = vsel %vm1197_vm14, %v2442_v6, 0.0  ;;  %2617 = vst.sshfl [vmem:[%s248_s20] sm:$0x33 pattern:$0x76325410] %v2451_v35 }
 0x4dd   : > { %2438 = vadd.xlane.f32.xlu1 %v2437_v25  ;;  %v2445_v62 = vadd.f32 %v2444_v21, %v2443_v12 }
 0x4df   : > { %2446 = vadd.xlane.f32.xlu0 %v2445_v62 }
 0x4e0   : > { %2868 = shalt.err (!%p2865_p3)
}
 0x4e1   : > { %s2869_s21 = scalar_lea.hbm %s3856_s14, 64  ;;  %s2873_s16 = scalar_lea.hbm %s3932_s5, 128 }
 0x4e2   : > { %p2870_p4 = scmp.ne.s32.totalorder %s3856_s14, %s2869_s21  ;;  %p2874_p9 = scmp.lt.u32.totalorder %s3856_s14, %s3932_s5 }
 0x4e3   : > { %p2875_p10 = scmp.lt.u32.totalorder %s2873_s16, %s2869_s21  ;;  %p2877_p12 = scmp.lt.u32.totalorder %s2869_s21, %s3856_s14 }
 0x4e4   : > { %p2871_p7 = pnand %p2870_p4, %p3110_p5 }
 0x4e5   : > { %p2876_p11 = por %p2875_p10, %p2874_p9 }
 0x4e6   : > { %p2872_p8 = pneg %p2871_p7 }
 0x4e7   : > { %p2878_p13 = por %p2877_p12, %p2876_p11 }
 0x4e9   : > { %p2879_p0 = pnand %p2878_p13, %p2872_p8 }
 0x4eb   : > { %2882 = shalt.err (!%p2879_p0)
}
 0x4ec   : > { %2652 = dma.vmem_to_hbm [thread:$0]  (%p3110_p5), %s2499_s12, 64, %s3856_s14, %s2479_s22   ;;  %v2463_v56 = vand.u32 127, %v315_v8  ;;  %vm2476_vm3 = vcmask 9216  }
 0x4ed   : > { %s2607_s15 = sshll.u32 %s3841_s18, 1  ;;  %s2622_s30 = sshll.u32 %s3093_s1, 5 }
 0x4ee   : > { %v2466_v51 = vsub.s32 %v2463_v56, %v3135_v10  ;;  %s255_s7 = scalar_lea.vmem [#allocation6], %s2607_s15  ;;  %s3883_s13 = scalar_lea.hbm %s3933_s6, %s2622_s30 }
 0x4ef   : > { %s2511_s23 = sshll.u32 %s255_s7, 4  ;;  %s2484_s1 = scalar_lea.sflag [#allocation7], %s3841_s18  ;;  %s3885_s23 = int_to_ptr.vmem [resolvable:$true] %s2511_s23 }
 0x4f0   : > { %s2883_s14 = scalar_lea.vmem %s3885_s23, 32  ;;  %s3030_s12 = smov [#allocation6]  }
 0x4f1   : > { %p2884_p1 = scmp.ne.s32.totalorder %s3885_s23, %s2883_s14  ;;  %s2887_s22 = sshll.u32 %s3030_s12, 4  ;;  %s2888_s22 = int_to_ptr.vmem [resolvable:$false] %s2887_s22 }
 0x4f2   : > { %s2889_s21 = scalar_lea.vmem %s2888_s22, 64  ;;  %p2890_p4 = scmp.lt.s32.totalorder %s3885_s23, %s2888_s22 }
 0x4f3   : > { %p2885_p2 = pnand %p2884_p1, %p3110_p5  ;;  %p2891_p7 = scmp.lt.s32.totalorder %s2889_s21, %s2883_s14 }
 0x4f5   : > { %p2886_p3 = pneg %p2885_p2  ;;  %p2892_p8 = por %p2891_p7, %p2890_p4 }
 0x4f7   : > { %p2893_p9 = pnand %p2892_p8, %p2886_p3 }
 0x56a   : > { %v2439_v33 = vpop.xlane.xlu1 %2438 }
 0x56b   : > { %v2467_v23 = vrot.slane %v2439_v33, %v2466_v51 }
 0x56c   : > { %v2447_v36 = vpop.xlane.xlu0 %2446 }
 0x56d   : > { %v2473_v29 = vrot.slane %v2447_v36, %v2466_v51 }
 0x56f   : > { %v2475_v8 = vsel %vm530_vm2, %v2467_v23, %v2473_v29 }
 0x570   : > { %2477 = vst.msk [vmem:[%s255_s7] sm:$0x3] %vm2476_vm3, %v2475_v8 }
 0x571   : > { %2896 = shalt.err (!%p2893_p9)
}
 0x572   : > { %s2897_s18 = scalar_lea.hbm %s3883_s13, 32  ;;  %s2901_s16 = scalar_lea.hbm %s3933_s6, 64 }
 0x573   : > { %p2898_p10 = scmp.ne.s32.totalorder %s3883_s13, %s2897_s18  ;;  %p2902_p13 = scmp.lt.u32.totalorder %s3883_s13, %s3933_s6 }
 0x574   : > { %p2903_p0 = scmp.lt.u32.totalorder %s2901_s16, %s2897_s18  ;;  %p2905_p2 = scmp.lt.u32.totalorder %s2897_s18, %s3883_s13 }
 0x575   : > { %p2899_p11 = pnand %p2898_p10, %p3110_p5 }
 0x576   : > { %p2904_p1 = por %p2903_p0, %p2902_p13 }
 0x577   : > { %p2900_p12 = pneg %p2899_p11 }
 0x578   : > { %p2906_p3 = por %p2905_p2, %p2904_p1 }
 0x57a   : > { %p2907_p4 = pnand %p2906_p3, %p2900_p12 }
 0x57c   : > { %2910 = shalt.err (!%p2907_p4)
}
 0x57d   : > { %2653 = dma.vmem_to_hbm [thread:$0]  (%p3110_p5), %s3885_s23, 32, %s3883_s13, %s2484_s1  }
 0x57e PF: > { %p2663_p7 = scmp.ge.s32.totalorder %s2949_s28, 2  ;;  %s2523_s15 = sand.u32 1, %s2937_s25  }
 0x57f   : > { %s2524_s30 = scalar_lea.sflag [#allocation5], %s2523_s15 }
 0x580   : > { %p2657_p8 = pnand %p2663_p7, %p3114_p6 }
 0x582   : > { %2928 = dma.done.wait (!%p2657_p8), %s2524_s30, 64  }
 0x583   : > { %2930 = vsyncadd (!%p2657_p8), %s2524_s30, 4294967232  ;;  %s2533_s7 = scalar_lea.sflag [#allocation7], %s2523_s15 }
 0x584   : > { %2932 = dma.done.wait (!%p2657_p8), %s2533_s7, 32  }
 0x585   : > { %2934 = vsyncadd (!%p2657_p8), %s2533_s7, 4294967264  ;;  %p22_p5 = scmp.ge.s32.totalorder %s3097_s29, 4   ;;  %s3959_s25 = smov %s2941_s26 }
 0x586   : > { %s3960_s26 = smov %s2945_s27  ;;  %s3961_s27 = smov %s3108_s8 }
 0x587   : > { %s3962_s28 = smov %s3097_s29  ;;  %24 = sbr.rel (!%p22_p5) target bundleno = 8 (0x8), region = 92 }
 0x58e   :  { %2538 = vsyncpa [#allocation5], 1 }
 0x58f   :  { %2540 = vsyncpa [#allocation5 + $0x1], 1 }
 0x590   :  { %2541 = vsyncpa [#allocation7], 1 }
 0x591   :  { %2543 = vsyncpa [#allocation7 + $0x1], 1 }

</bundles_post_ra>
